<compile_context>
chip_gen: v7x
topology: tpu7x:2x2x1
jax: 0.10.0
libtpu: 0.0.40
codegen_flags: <defaults>
</compile_context>

<pallas_src>
import functools

import jax
import jax.numpy as jnp
from jax import lax
from jax.experimental import pallas as pl
from jax.experimental.pallas import tpu as pltpu

DEPTH_DOWNSAMPLE = 4
SPATIAL_DOWNSAMPLE = 2

_VMEM_LIMIT_BYTES = 32 * 1024 * 1024      # safe on v5e/v6e/v7x scoped limits
_BLOCK_BUDGET_BYTES = 6 * 1024 * 1024     # per-buffer; ~12 MiB double-buffered


def _pick_tk(K, D, HW, itemsize, budget=_BLOCK_BUDGET_BYTES, min_steps=3):
    """Largest K-tile that divides K, fits the VMEM budget, and (when possible)
    leaves >= min_steps grid steps per batch so the DMA pipeline has work."""
    per_joint = D * HW * itemsize
    divisors = [d for d in range(1, K + 1) if K % d == 0]
    fits = [d for d in divisors if d * per_joint <= budget] or [1]
    pipelined = [d for d in fits if K // d >= min_steps]
    return max(pipelined) if pipelined else max(fits)


# ----------------------------- kernels --------------------------------------


def _xyc_rows(val_z, idx_ref, H, W):
    """torch-style (first-index) argmax chain.  val_z: (tk, HW) f32 -> (tk, 3)."""
    w_idx = idx_ref[0:1, :]                                   # (1, HW) int32
    h_idx = idx_ref[1:2, :]                                   # (1, HW) int32
    val_zyx = jnp.max(val_z, axis=1, keepdims=True)           # (tk, 1) global max
    is_max = val_z == val_zyx                                 # (tk, HW)
    # joint_x: first w-column containing the global max (torch argmax rule)
    joint_x = jnp.min(jnp.where(is_max, w_idx, W), axis=1, keepdims=True)
    # joint_y: first h within that column attaining the max
    sel = is_max & (w_idx == joint_x)
    joint_y = jnp.min(jnp.where(sel, h_idx, H), axis=1, keepdims=True)
    return jnp.concatenate(
        [joint_x.astype(jnp.float32), joint_y.astype(jnp.float32), val_zyx],
        axis=1,
    )


def _fused_att_xyc_kernel(idx_ref, hm_ref, att_ref, xyc_ref, *, tk, boundary, H, W):
    # idx_ref: (2, HW) int32 (row0 = w index, row1 = h index, precomputed)
    # hm_ref : (tk, D, HW)   att_ref: (2, HW) accumulator   xyc_ref: (tk, 3)
    kb = pl.program_id(1)

    @pl.when(kb == 0)
    def _():
        att_ref[...] = jnp.full(att_ref.shape, -jnp.inf, att_ref.dtype)

    hm = hm_ref[...].astype(jnp.float32)          # single cast; reduce in f32
    val_z = jnp.max(hm, axis=1)                   # (tk, HW): max over depth D

    # ---- attention: max over joints of each hand group, accumulated over kb ----
    joint_idx = kb * tk + lax.broadcasted_iota(jnp.int32, (tk, 1), 0)   # (tk, 1)
    in_right = joint_idx < boundary
    right = jnp.max(jnp.where(in_right, val_z, -jnp.inf), axis=0, keepdims=True)
    left = jnp.max(jnp.where(in_right, -jnp.inf, val_z), axis=0, keepdims=True)
    att_ref[0:1, :] = jnp.maximum(att_ref[0:1, :], right.astype(att_ref.dtype))
    att_ref[1:2, :] = jnp.maximum(att_ref[1:2, :], left.astype(att_ref.dtype))

    # ---- xyc: torch max/argmax chain per joint ----
    xyc_ref[...] = _xyc_rows(val_z, idx_ref, H, W)


def _xyc_only_kernel(idx_ref, hm_ref, xyc_ref, *, H, W):
    val_z = jnp.max(hm_ref[...].astype(jnp.float32), axis=1)
    xyc_ref[...] = _xyc_rows(val_z, idx_ref, H, W)


# ----------------------------- wrappers --------------------------------------


def _attention_and_xyc(hm_used, heatmap_attention):
    B, K, D, H, W = hm_used.shape
    HW = H * W
    hm_flat = hm_used.reshape(B, K, D, HW)

    tk = _pick_tk(K, D, HW, hm_used.dtype.itemsize)
    n_kb = K // tk

    # Precomputed lane-index tables (avoids per-element vector div/mod in-kernel).
    hw = jnp.arange(HW, dtype=jnp.int32)
    wh_idx = jnp.stack([hw % W, hw // W], axis=0)            # (2, HW)

    idx_spec = pl.BlockSpec((2, HW), lambda b, kb: (0, 0))
    hm_spec = pl.BlockSpec((None, tk, D, HW), lambda b, kb: (b, kb, 0, 0))
    # xyc is emitted as (B, n_kb, tk, 3) so the kernel block's last two dims
    # equal the full array dims (no (8,128) alignment issue), then reshaped.
    xyc_spec = pl.BlockSpec((None, None, tk, 3), lambda b, kb: (b, kb, 0, 0))
    xyc_shape = jax.ShapeDtypeStruct((B, n_kb, tk, 3), jnp.float32)

    if heatmap_attention:
        split_channels = 21 * 64      # hard-coded in the reference module
        if split_channels % D != 0 or split_channels // D > K:
            raise ValueError(
                "heatmap_attention requires the 21*64 channel split to align "
                f"with whole joints; got K={K}, D={D}")
        boundary = split_channels // D    # first `boundary` joints = right hand

        att_spec = pl.BlockSpec((None, 2, HW), lambda b, kb: (b, 0, 0))
        attention, xyc4 = pl.pallas_call(
            functools.partial(_fused_att_xyc_kernel,
                              tk=tk, boundary=boundary, H=H, W=W),
            grid=(B, n_kb),
            in_specs=[idx_spec, hm_spec],
            out_specs=[att_spec, xyc_spec],
            out_shape=[jax.ShapeDtypeStruct((B, 2, HW), hm_used.dtype), xyc_shape],
            compiler_params=pltpu.CompilerParams(
                dimension_semantics=("parallel", "arbitrary"),
                vmem_limit_bytes=_VMEM_LIMIT_BYTES),
        )(wh_idx, hm_flat)
        attention = attention.reshape(B, 2, H, W)
    else:
        attention = None
        xyc4 = pl.pallas_call(
            functools.partial(_xyc_only_kernel, H=H, W=W),
            grid=(B, n_kb),
            in_specs=[idx_spec, hm_spec],
            out_specs=xyc_spec,
            out_shape=xyc_shape,
            compiler_params=pltpu.CompilerParams(
                dimension_semantics=("parallel", "parallel"),
                vmem_limit_bytes=_VMEM_LIMIT_BYTES),
        )(wh_idx, hm_flat)

    return xyc4.reshape(B, K, 3), attention


def intershape_forward(x, heatmap, heatmap_attention=True, gt_heatmap=None):
    """Pallas implementation of InterShape.forward (intershape=True path)."""
    B, K, D, H, W = heatmap.shape

    # x + 0.5 feeds the heatmap predictor backbone.
    # TODO(synk): BackboneNet/PoseNet bodies not provided; leave the +0.5 to XLA
    # so it fuses into the backbone's first conv instead of a standalone kernel.
    x_plus = x + 0.5

    # downsampled_heatmap = heatmap[:, :, ::4, ::2, ::2]  (always from the
    # predicted heatmap, before any gt substitution — matches torch ordering).
    # TODO(synk): could be emitted from the fused kernel's VMEM-resident tile to
    # save this HBM pass, but the stride-2 pick on the flattened lane axis needs
    # cross-lane compaction; kept as an XLA strided slice for now.
    ds = heatmap[:, :, ::DEPTH_DOWNSAMPLE, ::SPATIAL_DOWNSAMPLE, ::SPATIAL_DOWNSAMPLE]
    ds_flat = ds.reshape(B, K * ds.shape[2], ds.shape[3], ds.shape[4])

    # torch reassigns `heatmap = gt_heatmap` inside the attention branch, so when
    # a gt heatmap is supplied BOTH attention and xyc come from it.
    hm_used = heatmap
    if heatmap_attention and gt_heatmap is not None:
        hm_used = gt_heatmap

    xyc, attention = _attention_and_xyc(hm_used, heatmap_attention)

    # TODO(synk): MeshRegNet (self.mesh_reg) definition not provided; return its
    # would-be inputs (x_plus, downsampled heatmap) in place of `output`.
    return (x_plus, ds_flat), xyc, attention


# ----------------------------- test ------------------------------------------

if __name__ == "__main__":
    key = jax.random.PRNGKey(0)
    k1, k2, k3 = jax.random.split(key, 3)

    # Module-consistent shapes: 42 = 21 joints x 2 hands, depth 64 (the module
    # hard-codes the 21*64 channel split), reduced spatial 16x16.
    B, C, IMG = 2, 3, 32
    K, D, H, W = 42, 64, 16, 16

    x = jax.random.uniform(k1, (B, C, IMG, IMG), jnp.float32) - 0.5
    heatmap = jax.random.uniform(k2, (B, K, D, H, W), jnp.float32)
    # Plant exact ties for joint (b=0, k=0) to exercise torch-style first-index
    # argmax tie-breaking (continuous random data never ties).
    heatmap = heatmap.at[0, 0, 3, 5, 9].set(2.0)
    heatmap = heatmap.at[0, 0, 10, 2, 12].set(2.0)
    heatmap = heatmap.at[0, 0, 1, 7, 9].set(2.0)

    def ref_outputs(hm_used, hm_pred):
        # pure-JAX reference mirroring the PyTorch forward semantics
        val_z = hm_used.max(axis=2)
        val_zy = val_z.max(axis=2)
        idx_zy = val_z.argmax(axis=2)
        val_zyx = val_zy.max(axis=2)
        joint_x = val_zy.argmax(axis=2)
        joint_y = jnp.take_along_axis(idx_zy, joint_x[..., None], axis=2)[..., 0]
        xyc_ref = jnp.stack([joint_x, joint_y, val_zyx], axis=2).astype(jnp.float32)
        am = hm_used.reshape(B, K * D, H, W)
        att_ref = jnp.concatenate(
            [am[:, :21 * 64].max(axis=1, keepdims=True),
             am[:, 21 * 64:].max(axis=1, keepdims=True)], axis=1)
        ds_ref = hm_pred[:, :, ::4, ::2, ::2]
        ds_ref = ds_ref.reshape(B, -1, ds_ref.shape[3], ds_ref.shape[4])
        return xyc_ref, att_ref, ds_ref

    # --- main path: heatmap_attention=True, no gt heatmap ---
    (x_plus, ds_flat), xyc, attention = intershape_forward(x, heatmap)
    jax.block_until_ready((x_plus, ds_flat, xyc, attention))
    xyc_ref, att_ref, ds_ref = ref_outputs(heatmap, heatmap)
    assert jnp.allclose(xyc, xyc_ref)
    assert jnp.allclose(attention, att_ref)
    assert jnp.allclose(x_plus, x + 0.5)
    assert jnp.allclose(ds_flat, ds_ref)

    # --- gt_heatmap path: attention AND xyc from gt, downsample from pred ---
    gt = jax.random.uniform(k3, (B, K, D, H, W), jnp.float32)
    (_, ds2), xyc_gt, att_gt = intershape_forward(x, heatmap, gt_heatmap=gt)
    jax.block_until_ready((ds2, xyc_gt, att_gt))
    xyc_ref2, att_ref2, ds_ref2 = ref_outputs(gt, heatmap)
    assert jnp.allclose(xyc_gt, xyc_ref2)
    assert jnp.allclose(att_gt, att_ref2)
    assert jnp.allclose(ds2, ds_ref2)

    # --- heatmap_attention=False path ---
    (_, _), xyc_na, att_na = intershape_forward(x, heatmap, heatmap_attention=False)
    jax.block_until_ready(xyc_na)
    assert att_na is None
    assert jnp.allclose(xyc_na, xyc_ref)

    print("KERNEL_OK")
</pallas_src>

<mosaic_0001>
module attributes {stable_mosaic.version = 11 : i64} {
  func.func @_fused_att_xyc_kernel(%arg0: i32, %arg1: i32, %arg2: memref<2x256xi32, #tpu.memory_space<vmem>>, %arg3: memref<1x14x64x256xf32, #tpu.memory_space<vmem>>, %arg4: memref<1x2x256xf32, #tpu.memory_space<vmem>>, %arg5: memref<1x1x14x3xf32, #tpu.memory_space<vmem>>) attributes {dimension_semantics = [#tpu.dimension_semantics<parallel>, #tpu.dimension_semantics<arbitrary>], iteration_bounds = array<i64: 2, 3>, scalar_prefetch = 0 : i64, scratch_operands = 0 : i64, tpu.core_type = #tpu.core_type<tc>, window_params = [{pipeline_mode = #tpu.pipeline_mode<synchronous>, transform_indices = @transform_0, window_bounds = array<i64: 2, 256>}, {transform_indices = @transform_1, window_bounds = array<i64: 1, 14, 64, 256>}, {transform_indices = @transform_2, window_bounds = array<i64: 1, 2, 256>}, {transform_indices = @transform_3, window_bounds = array<i64: 1, 1, 14, 3>}]} {
    %c0_i32 = arith.constant 0 : i32
    %0 = arith.cmpi eq, %arg1, %c0_i32 : i32
    %1 = arith.extui %0 : i1 to i32
    %c0_i32_0 = arith.constant 0 : i32
    %2 = arith.cmpi ne, %1, %c0_i32_0 : i32
    scf.if %2 {
      %cst_31 = arith.constant 0xFF800000 : f32
      %64 = vector.broadcast %cst_31 : f32 to vector<2x256xf32>
      %c0_32 = arith.constant 0 : index
      %c0_33 = arith.constant 0 : index
      %c0_34 = arith.constant 0 : index
      %65 = vector.load %arg4[%c0_32, %c0_33, %c0_34] : memref<1x2x256xf32, #tpu.memory_space<vmem>>, vector<1x2x256xf32>
      %66 = vector.shape_cast %65 : vector<1x2x256xf32> to vector<2x256xf32>
      %67 = vector.shape_cast %64 : vector<2x256xf32> to vector<1x2x256xf32>
      tpu.vector_store %arg4[%c0_32, %c0_33, %c0_34], %67 {strides = array<i32>} : memref<1x2x256xf32, #tpu.memory_space<vmem>>, vector<1x2x256xf32>,
    } else {
    }
    %c0 = arith.constant 0 : index
    %c0_1 = arith.constant 0 : index
    %c0_2 = arith.constant 0 : index
    %c0_3 = arith.constant 0 : index
    %3 = vector.load %arg3[%c0, %c0_1, %c0_2, %c0_3] : memref<1x14x64x256xf32, #tpu.memory_space<vmem>>, vector<1x14x64x256xf32>
    %4 = vector.shape_cast %3 : vector<1x14x64x256xf32> to vector<14x64x256xf32>
    %cst = arith.constant dense<0xFF800000> : vector<14x256xf32>
    %5 = vector.multi_reduction <maximumf>, %4, %cst [1] : vector<14x64x256xf32> to vector<14x256xf32>
    %c14_i32 = arith.constant 14 : i32
    %6 = arith.muli %arg1, %c14_i32 : i32
    %7 = tpu.iota {dimensions = array<i32: 0>} : vector<14x1xi32>
    %8 = vector.broadcast %6 : i32 to vector<14x1xi32>
    %9 = arith.addi %8, %7 : vector<14x1xi32>
    %c21_i32 = arith.constant 21 : i32
    %10 = vector.broadcast %c21_i32 : i32 to vector<14x1xi32>
    %11 = arith.cmpi slt, %9, %10 : vector<14x1xi32>
    %cst_4 = arith.constant 0xFF800000 : f32
    %12 = vector.shape_cast %11 : vector<14x1xi1> to vector<14x1xi1>
    %13 = vector.broadcast %12 : vector<14x1xi1> to vector<14x256xi1>
    %14 = vector.broadcast %cst_4 : f32 to vector<14x256xf32>
    %15 = arith.select %13, %5, %14 : vector<14x256xi1>, vector<14x256xf32>
    %cst_5 = arith.constant dense<0xFF800000> : vector<256xf32>
    %16 = vector.multi_reduction <maximumf>, %15, %cst_5 [0] : vector<14x256xf32> to vector<256xf32>
    %17 = vector.shape_cast %16 : vector<256xf32> to vector<1x256xf32>
    %cst_6 = arith.constant 0xFF800000 : f32
    %18 = vector.shape_cast %11 : vector<14x1xi1> to vector<14x1xi1>
    %19 = vector.broadcast %18 : vector<14x1xi1> to vector<14x256xi1>
    %20 = vector.broadcast %cst_6 : f32 to vector<14x256xf32>
    %21 = arith.select %19, %20, %5 : vector<14x256xi1>, vector<14x256xf32>
    %cst_7 = arith.constant dense<0xFF800000> : vector<256xf32>
    %22 = vector.multi_reduction <maximumf>, %21, %cst_7 [0] : vector<14x256xf32> to vector<256xf32>
    %23 = vector.shape_cast %22 : vector<256xf32> to vector<1x256xf32>
    %c0_8 = arith.constant 0 : index
    %c0_9 = arith.constant 0 : index
    %c0_10 = arith.constant 0 : index
    %24 = vector.load %arg4[%c0_8, %c0_9, %c0_10] : memref<1x2x256xf32, #tpu.memory_space<vmem>>, vector<1x1x256xf32>
    %25 = vector.shape_cast %24 : vector<1x1x256xf32> to vector<1x256xf32>
    %26 = arith.maximumf %25, %17 : vector<1x256xf32>
    %c0_11 = arith.constant 0 : index
    %c0_12 = arith.constant 0 : index
    %c0_13 = arith.constant 0 : index
    %27 = vector.load %arg4[%c0_11, %c0_12, %c0_13] : memref<1x2x256xf32, #tpu.memory_space<vmem>>, vector<1x1x256xf32>
    %28 = vector.shape_cast %27 : vector<1x1x256xf32> to vector<1x256xf32>
    %29 = vector.shape_cast %26 : vector<1x256xf32> to vector<1x1x256xf32>
    tpu.vector_store %arg4[%c0_11, %c0_12, %c0_13], %29 {strides = array<i32>} : memref<1x2x256xf32, #tpu.memory_space<vmem>>, vector<1x1x256xf32>,
    %c0_14 = arith.constant 0 : index
    %c1 = arith.constant 1 : index
    %c0_15 = arith.constant 0 : index
    %30 = vector.load %arg4[%c0_14, %c1, %c0_15] : memref<1x2x256xf32, #tpu.memory_space<vmem>>, vector<1x1x256xf32>
    %31 = vector.shape_cast %30 : vector<1x1x256xf32> to vector<1x256xf32>
    %32 = arith.maximumf %31, %23 : vector<1x256xf32>
    %c0_16 = arith.constant 0 : index
    %c1_17 = arith.constant 1 : index
    %c0_18 = arith.constant 0 : index
    %33 = vector.load %arg4[%c0_16, %c1_17, %c0_18] : memref<1x2x256xf32, #tpu.memory_space<vmem>>, vector<1x1x256xf32>
    %34 = vector.shape_cast %33 : vector<1x1x256xf32> to vector<1x256xf32>
    %35 = vector.shape_cast %32 : vector<1x256xf32> to vector<1x1x256xf32>
    tpu.vector_store %arg4[%c0_16, %c1_17, %c0_18], %35 {strides = array<i32>} : memref<1x2x256xf32, #tpu.memory_space<vmem>>, vector<1x1x256xf32>,
    %c0_19 = arith.constant 0 : index
    %c0_20 = arith.constant 0 : index
    %36 = vector.load %arg2[%c0_19, %c0_20] : memref<2x256xi32, #tpu.memory_space<vmem>>, vector<1x256xi32>
    %c1_21 = arith.constant 1 : index
    %c0_22 = arith.constant 0 : index
    %37 = vector.load %arg2[%c1_21, %c0_22] : memref<2x256xi32, #tpu.memory_space<vmem>>, vector<1x256xi32>
    %cst_23 = arith.constant dense<0xFF800000> : vector<14xf32>
    %38 = vector.multi_reduction <maximumf>, %5, %cst_23 [1] : vector<14x256xf32> to vector<14xf32>
    %39 = vector.shape_cast %38 : vector<14xf32> to vector<14x1xf32>
    %40 = vector.broadcast %39 : vector<14x1xf32> to vector<14x256xf32>
    %41 = arith.cmpf oeq, %5, %40 : vector<14x256xf32>
    %c16_i32 = arith.constant 16 : i32
    %42 = vector.shape_cast %36 : vector<1x256xi32> to vector<1x256xi32>
    %43 = vector.broadcast %42 : vector<1x256xi32> to vector<14x256xi32>
    %44 = vector.broadcast %c16_i32 : i32 to vector<14x256xi32>
    %45 = arith.select %41, %43, %44 : vector<14x256xi1>, vector<14x256xi32>
    %cst_24 = arith.constant dense<2147483647> : vector<14xi32>
    %46 = vector.multi_reduction <minsi>, %45, %cst_24 [1] : vector<14x256xi32> to vector<14xi32>
    %47 = vector.shape_cast %46 : vector<14xi32> to vector<14x1xi32>
    %48 = vector.broadcast %36 : vector<1x256xi32> to vector<14x256xi32>
    %49 = vector.broadcast %47 : vector<14x1xi32> to vector<14x256xi32>
    %50 = arith.cmpi eq, %48, %49 : vector<14x256xi32>
    %51 = arith.andi %41, %50 : vector<14x256xi1>
    %c16_i32_25 = arith.constant 16 : i32
    %52 = vector.shape_cast %37 : vector<1x256xi32> to vector<1x256xi32>
    %53 = vector.broadcast %52 : vector<1x256xi32> to vector<14x256xi32>
    %54 = vector.broadcast %c16_i32_25 : i32 to vector<14x256xi32>
    %55 = arith.select %51, %53, %54 : vector<14x256xi1>, vector<14x256xi32>
    %cst_26 = arith.constant dense<2147483647> : vector<14xi32>
    %56 = vector.multi_reduction <minsi>, %55, %cst_26 [1] : vector<14x256xi32> to vector<14xi32>
    %57 = vector.shape_cast %56 : vector<14xi32> to vector<14x1xi32>
    %58 = arith.sitofp %47 : vector<14x1xi32> to vector<14x1xf32>
    %59 = arith.sitofp %57 : vector<14x1xi32> to vector<14x1xf32>
    %60 = tpu.concatenate %58, %59, %39 in 1 : vector<14x1xf32>, vector<14x1xf32>, vector<14x1xf32> -> vector<14x3xf32>
    %c0_27 = arith.constant 0 : index
    %c0_28 = arith.constant 0 : index
    %c0_29 = arith.constant 0 : index
    %c0_30 = arith.constant 0 : index
    %61 = vector.load %arg5[%c0_27, %c0_28, %c0_29, %c0_30] : memref<1x1x14x3xf32, #tpu.memory_space<vmem>>, vector<1x1x14x3xf32>
    %62 = vector.shape_cast %61 : vector<1x1x14x3xf32> to vector<14x3xf32>
    %63 = vector.shape_cast %60 : vector<14x3xf32> to vector<1x1x14x3xf32>
    tpu.vector_store %arg5[%c0_27, %c0_28, %c0_29, %c0_30], %63 {strides = array<i32>} : memref<1x1x14x3xf32, #tpu.memory_space<vmem>>, vector<1x1x14x3xf32>,
    return
  }
  func.func @transform_0(%arg0: i32, %arg1: i32) -> (i32, i32) {
    %c0_i32 = arith.constant 0 : i32
    %c0_i32_0 = arith.constant 0 : i32
    %c0_i32_1 = arith.constant 0 : i32
    return %c0_i32, %c0_i32_0 : i32, i32
  }
  func.func @transform_1(%arg0: i32, %arg1: i32) -> (i32, i32, i32, i32) {
    %c0_i32 = arith.constant 0 : i32
    %c0_i32_0 = arith.constant 0 : i32
    %c0_i32_1 = arith.constant 0 : i32
    return %arg0, %arg1, %c0_i32, %c0_i32_0 : i32, i32, i32, i32
  }
  func.func @transform_2(%arg0: i32, %arg1: i32) -> (i32, i32, i32) {
    %c0_i32 = arith.constant 0 : i32
    %c0_i32_0 = arith.constant 0 : i32
    %c0_i32_1 = arith.constant 0 : i32
    return %arg0, %c0_i32, %c0_i32_0 : i32, i32, i32
  }
  func.func @transform_3(%arg0: i32, %arg1: i32) -> (i32, i32, i32, i32) {
    %c0_i32 = arith.constant 0 : i32
    %c0_i32_0 = arith.constant 0 : i32
    %c0_i32_1 = arith.constant 0 : i32
    return %arg0, %arg1, %c0_i32, %c0_i32_0 : i32, i32, i32, i32
  }
}

</mosaic_0001>

<bundles_post_ra>
// kernel: tpu_custom_call.1
= control target key start
LH: loop header
LB: loop body
LE: loop exit
PB: predicated region body
PF: predicated region fallthrough
CT: control target
= control target key end

     0   :  { %s3184_s0 = inlined_call_operand.hbm [shape: s32[2,256], index: 0, kind: input, shape index: {}]   ;;  %s3185_s1 = inlined_call_operand.hbm [shape: f32[2,42,64,256], index: 1, kind: input, shape index: {}]   ;;  %s3186_s2 = inlined_call_operand.hbm [shape: f32[2,2,256], index: 2, kind: output, shape index: {0}]   ;;  %s3187_s3 = inlined_call_operand.vmem [shape: f32[2,3,14,3], index: 3, kind: output, shape index: {1}]  }
   0x1   :  { %3231 = sst [smem:[#allocation17_spill]] %s3184_s0 }
   0x2   :  { %9 = vsyncpa [#allocation3], 0 }
   0x3   :  { %10 = vsyncpa [#allocation6], 0 }
   0x4   :  { %12 = vsyncpa [#allocation6 + $0x1], 0 }
   0x5   :  { %13 = vsyncpa [#allocation4], 0 }
   0x6   :  { %15 = vsyncpa [#allocation4 + $0x1], 0  ;;  %s1927_s12 = smov 0   ;;  %s1929_s13 = smov 0  }
   0x7   :  { %s1931_s14 = smov 0   ;;  %s1933_s15 = smov 0  }
   0x8   :  { %s1935_s16 = smov 0   ;;  %s1937_s17 = smov 0  }
   0x9   :  { %s1939_s18 = smov 0   ;;  %s1941_s19 = smov 0  }
   0xa   :  { %s1943_s20 = smov 0   ;;  %s1945_s21 = smov 0  }
   0xb   :  { %s1947_s22 = smov 0  }
   0xc LB: > { %3232 = sst [smem:[#allocation11_spill]] %s1857_s12  ;;  %s1569_s23 = sadd.s32 4294967295, %s1897_s22   ;;  %s1897_s22 = sphi %s1947_s22, %s21_s22   ;;  %s1893_s21 = sphi %s1945_s21, %s3443_s21   ;;  %s1889_s20 = sphi %s1943_s20, %s3434_s20   ;;  %s1885_s19 = sphi %s1941_s19, %s3442_s19   ;;  %s1881_s18 = sphi %s1939_s18, %s3433_s18   ;;  %s1877_s17 = sphi %s1937_s17, %s3441_s17   ;;  %s1873_s16 = sphi %s1935_s16, %s3440_s16   ;;  %s1869_s15 = sphi %s1933_s15, %s3439_s15   ;;  %s1865_s14 = sphi %s1931_s14, %s3438_s14   ;;  %s1861_s13 = sphi %s1929_s13, %s3437_s13   ;;  %s1857_s12 = sphi %s1927_s12, %s3436_s12  }
   0xd   : > { %3233 = sst [smem:[#allocation12_spill]] %s1889_s20  ;;  %s1570_s24 = sadd.s32 4294967294, %s1897_s22  }
   0xe   : > { %p70_p0 = scmp.ne.s32.totalorder %s1877_s17, %s1873_s16  ;;  %p71_p1 = scmp.eq.s32.totalorder %s1897_s22, 0 }
   0xf   : > { %p76_p2 = scmp.ne.s32.totalorder %s1873_s16, %s1869_s15  ;;  %p1987_p3 = scmp.eq.s32.totalorder %s1569_s23, 0 }
  0x10   : > { %p1992_p4 = por %p71_p1, %p70_p0  ;;  %p99_p5 = scmp.ne.s32.totalorder %s1865_s14, %s1861_s13 }
  0x11   : > { %s3234_s26 = scalar_select %p1987_p3, 1, 0 }
  0x12   : > { %p2000_p6 = por %p1987_p3, %p76_p2  ;;  %p100_p7 = scmp.eq.s32.totalorder %s1569_s23, 5 }
  0x13   : > { %p105_p8 = scmp.ne.s32.totalorder %s1861_s13, %s1857_s12  ;;  %p106_p9 = scmp.eq.s32.totalorder %s1570_s24, 5 }
  0x14   : > { %s3236_s29 = scalar_select %p2000_p6, 1, 0 }
  0x15   : > { %p2006_p10 = por %p100_p7, %p99_p5  ;;  %p1571_p11 = scmp.ge.s32.totalorder %s1897_s22, 1 }
  0x16   : > { %p2011_p12 = por %p106_p9, %p105_p8  ;;  %p141_p13 = scmp.lt.s32.totalorder %s1897_s22, 7 }
  0x17   : > { %s3237_s30 = scalar_select %p2006_p10, 1, 0 }
  0x18   : > { %s3238_s4 = scalar_select %p2011_p12, 1, 0 }
  0x19   : > { %p2016_p0 = pnand %p1571_p11, %p141_p13  ;;  %s1899_s6 = smov [#allocation2]  }
  0x1a   : > { %3239 = sst [smem:[#allocation13_spill]] %s3238_s4  ;;  %s154_s7 = sshll.u32 %s1899_s6, 4  ;;  %s155_s7 = int_to_ptr.vmem [resolvable:$true] %s154_s7 }
  0x1b   : > { %s3240_s5 = scalar_select %p2016_p0, 1, 0 }
  0x1c   : > { %p1603_p1 = pneg %p2016_p0  ;;  %p1616_p2 = scmp.lt.s32.totalorder %s1897_s22, 6 }
  0x1d   : > { %s3243_s0 = sld [smem:[#allocation17_spill]] }
  0x1e   : > { %p2025_p5 = pnand %p1603_p1, %p1987_p3  ;;  %p2031_p7 = pnand %p1616_p2, %p1992_p4 }
  0x20   : > { %s3242_s9 = scalar_select %p2031_p7, 1, 0 }
  0x21   : > { %p1715_p9 = pneg %p2025_p5 }
  0x23   : > { %s1713_s15 = scalar_lea.hbm %s3243_s0, 64 }
  0x24   : > { %p1714_p8 = scmp.ne.s32.totalorder %s3243_s0, %s1713_s15  ;;  %p1720_p1 = scmp.lt.u32.totalorder %s1713_s15, %s3243_s0 }
  0x26   : > { %p1716_p11 = pnand %p1715_p9, %p1714_p8 }
  0x28   : > { %p1717_p13 = pneg %p1716_p11 }
  0x2a   : > { %p1722_p4 = pnand %p1720_p1, %p1717_p13 }
  0x2c   : > { %1725 = shalt.err (!%p1722_p4)
}
  0x2d   : > { %s1726_s28 = scalar_lea.vmem %s155_s7, 64  ;;  %p1734_p6 = scmp.lt.s32.totalorder %s155_s7, %s155_s7 }
  0x2e   : > { %p1727_p2 = scmp.ne.s32.totalorder %s155_s7, %s1726_s28  ;;  %p1735_p3 = scmp.lt.s32.totalorder %s1726_s28, %s1726_s28 }
  0x30   : > { %p1729_p12 = pnand %p1727_p2, %p1715_p9  ;;  %p1736_p0 = por %p1735_p3, %p1734_p6 }
  0x32   : > { %p1730_p10 = pneg %p1729_p12 }
  0x34   : > { %p1737_p7 = pnand %p1736_p0, %p1730_p10 }
  0x36   : > { %1740 = shalt.err (!%p1737_p7)
}
  0x37   : > { %1606 = dma.hbm_to_vmem [thread:$0]  (!%p2025_p5), %s3243_s0, 64, %s155_s7, [#allocation3]  }
  0x38   : > { %s30_s25 = sadd.s32 1, %s1889_s20  ;;  %s33_s15 = sadd.s32 1, %s1893_s21 }
  0x39   : > { %p31_p12 = scmp.ge.s32.totalorder %s30_s25, 3  ;;  %s165_s23 = sand.u32 1, %s1877_s17  }
  0x3a   : > { %s1591_s24 = smul.u32 1792, %s165_s23  ;;  %p3248_p5 = scmp.ne.s32.totalorder %s3242_s9, 0 }
  0x3b   : > { %s3445_s25 = smov (%p31_p12, %s30_s25), 0  ;;  %s3447_s15 = smov (!%p31_p12, %s33_s15), %s1893_s21 }
  0x3c   : > { %3244 = sst [smem:[#allocation14_spill]] %s3445_s25  ;;  %s59_s8 = ssub.s32 %s1889_s20, %s3445_s25 }
  0x3d   : > { %p35_p3 = scmp.ge.s32.totalorder %s3447_s15, 2  ;;  %s1589_s6 = smul.u32 224, %s1889_s20 }
  0x3e   : > { %s1592_s28 = smul.u32 672, %s1893_s21  ;;  %s169_s10 = scalar_lea.vmem [#allocation5], %s1591_s24 }
  0x3f   : > { %s179_s7 = sshll.u32 %s169_s10, 4  ;;  %s3449_s15 = smov (%p35_p3, %s3447_s15), 0  ;;  %s2063_s7 = int_to_ptr.vmem [resolvable:$true] %s179_s7 }
  0x40   : > { %3245 = sst [smem:[#allocation15_spill]] %s3449_s15  ;;  %s176_s11 = sadd.s32 %s1592_s28, %s1589_s6 }
  0x41   : > { %s58_s27 = ssub.s32 %s1893_s21, %s3449_s15  ;;  %s1575_s0 = sshll.u32 %s176_s11, 7 }
  0x42   : > { %s60_s4 = sor.u32 %s59_s8, %s58_s27  ;;  %p87_p6 = scmp.eq.s32.totalorder %s58_s27, 0 }
  0x43   : > { %p61_p10 = scmp.eq.s32.totalorder %s60_s4, 0  ;;  %s2070_s20 = scalar_lea.hbm %s3185_s1, %s1575_s0 }
  0x44   : > { %s3246_s24 = sadd.s32 1, %s1865_s14  ;;  %s3247_s6 = sadd.s32 1, %s1877_s17 }
  0x45   : > { %s2075_s10 = scalar_select %p87_p6, %s1865_s14, %s3246_s24  }
  0x46   : > { %s2080_s28 = scalar_select %p61_p10, %s1877_s17, %s3247_s6  }
  0x47   : > { %s2082_s15 = scalar_lea.sflag [#allocation6], %s165_s23  ;;  %s1741_s8 = scalar_lea.hbm %s2070_s20, 28672 }
  0x48   : > { %p1742_p0 = scmp.ne.s32.totalorder %s2070_s20, %s1741_s8  ;;  %p1743_p7 = pneg %p3248_p5 }
  0x49   : > { %s1746_s27 = scalar_lea.hbm %s3185_s1, 172032  ;;  %p1747_p11 = scmp.lt.u32.totalorder %s2070_s20, %s3185_s1 }
  0x4a   : > { %p1744_p8 = pnand %p1743_p7, %p1742_p0  ;;  %p1748_p13 = scmp.lt.u32.totalorder %s1746_s27, %s1741_s8 }
  0x4b   : > { %p1750_p4 = scmp.lt.u32.totalorder %s1741_s8, %s2070_s20 }
  0x4c   : > { %p1745_p9 = pneg %p1744_p8  ;;  %p1749_p1 = por %p1748_p13, %p1747_p11 }
  0x4e   : > { %p1751_p2 = por %p1750_p4, %p1749_p1 }
  0x50   : > { %p1752_p12 = pnand %p1751_p2, %p1745_p9 }
  0x52   : > { %1755 = shalt.err (!%p1752_p12)
}
  0x53   : > { %s1756_s23 = scalar_lea.vmem %s2063_s7, 28672  ;;  %s1900_s11 = smov [#allocation5]  }
  0x54   : > { %p1757_p3 = scmp.ne.s32.totalorder %s2063_s7, %s1756_s23  ;;  %s1761_s24 = sshll.u32 %s1900_s11, 4  ;;  %s1762_s24 = int_to_ptr.vmem [resolvable:$false] %s1761_s24 }
  0x55   : > { %s1763_s6 = scalar_lea.vmem %s1762_s24, 57344  ;;  %p1764_p0 = scmp.lt.s32.totalorder %s2063_s7, %s1762_s24 }
  0x56   : > { %p1759_p6 = pnand %p1757_p3, %p1743_p7  ;;  %p1765_p8 = scmp.lt.s32.totalorder %s1763_s6, %s1756_s23 }
  0x58   : > { %p1760_p10 = pneg %p1759_p6  ;;  %p1766_p11 = por %p1765_p8, %p1764_p0 }
  0x5a   : > { %p1767_p13 = pnand %p1766_p11, %p1760_p10 }
  0x5c   : > { %1770 = shalt.err (!%p1767_p13)
}
  0x5d   : > { %s1901_s8 = smov 256   ;;  %s1902_s0 = smov 16  }
  0x5e   : > { %1610 = dma.hbm_to_vmem [thread:$0]  (!%p3248_p5), %s2070_s20, 28672, %s2063_s7, %s2082_s15, %s1901_s8, %s1901_s8, %s1902_s0  }
  0x5f   : > { %p3249_p7 = scmp.ne.s32.totalorder %s3240_s5, 0 }
  0x61   : > { %191 = sbr.rel (%p3249_p7) target bundleno = 1022 (0x3fe), region = 28 }
  0x68   : > { %p3250_p9 = scmp.ne.s32.totalorder %s3234_s26, 0 }
  0x6a   : > { %1844 = dma.done.wait (%p3250_p9), [#allocation3], 64  }
  0x6b   : > { %1846 = vsyncadd (%p3250_p9), [#allocation3], 4294967232  ;;  %s197_s12 = sand.u32 1, %s1873_s16   ;;  %p3251_p1 = scmp.ne.s32.totalorder %s3236_s29, 0 }
  0x6c   : > { %s1593_s27 = smul.u32 1792, %s197_s12  ;;  %s198_s4 = scalar_lea.sflag [#allocation6], %s197_s12 }
  0x6e   : > { %s2117_s25 = scalar_lea.vmem [#allocation5], %s1593_s27 }
  0x6f   : > { %1848 = dma.done.wait (%p3251_p1), %s198_s4, 28672  }
  0x70   : > { %1850 = vsyncadd (%p3251_p1), %s198_s4, 4294938624  ;;  %s219_s20 = sand.u32 1, %s1861_s13   ;;  %p234_p5 = scmp.lt.s32.totalorder %s1885_s19, 1 }
  0x71   : > { %s1578_s26 = sshll.u32 %s219_s20, 2  ;;  %p236_p4 = scmp.lt.s32.totalorder %s1881_s18, 2 }
  0x72   : > { %s235_s5 = scalar_select %p234_p5, %s1885_s19, 1 }
  0x73   : > { %s237_s9 = scalar_select %p236_p4, %s1881_s18, 2 }
  0x74   : > { %s1594_s15 = smul.u32 6, %s235_s5  ;;  %s2135_s8 = scalar_lea.vmem [#allocation7], %s1578_s26 }
  0x75   : > { %s1579_s7 = sshll.u32 %s237_s9, 1  ;;  %p1581_p2 = scmp.ne.s32.totalorder %s1881_s18, 0 }
  0x76   : > { %s240_s23 = sadd.s32 %s1594_s15, %s1579_s7  ;;  %v1903_v0 = vmov (!%p1581_p2), -inf  }
  0x77   : > { %s1580_s11 = sshll.u32 %s240_s23, 3  ;;  %246 = sbr.rel (%p1581_p2) target bundleno = 126 (0x7e), region = 40  ;;  %247 = vst [vmem:[%s2135_s8] sm:$0xf] (!%p1581_p2), %v1903_v0 }
  0x78   : > { %s2133_s6 = scalar_lea.vmem %s3187_s3, %s1580_s11 }
  0x7e PF: > { %v248_v1 = vld [vmem:[%s2117_s25] sm:$0xff]  ;;  %v249_v2 = vld [vmem:[%s2117_s25 + $0x8] sm:$0xff]  ;;  %v250_v3 = vld [vmem:[%s2117_s25 + $0x10] sm:$0xff]  ;;  %vm3206_vm0 = vcmask 1041409   ;;  %vm3205_vm1 = vcmask 1042434   ;;  %vm3204_vm2 = vcmask 1043459  }
  0x7f   : > { %v251_v4 = vld [vmem:[%s2117_s25 + $0x18] sm:$0xff]  ;;  %v252_v5 = vld [vmem:[%s2117_s25 + $0x20] sm:$0xff]  ;;  %v253_v6 = vld [vmem:[%s2117_s25 + $0x28] sm:$0xff]  ;;  %v472_v7 = vmax.f32 %v248_v1, %v250_v3  ;;  %vm3203_vm3 = vcmask 1044484   ;;  %vm3202_vm4 = vcmask 1045509   ;;  %vm3201_vm5 = vcmask 1046534  }
  0x80   : > { %v254_v8 = vld [vmem:[%s2117_s25 + $0x30] sm:$0xff]  ;;  %v485_v9 = vmax.f32 %v249_v2, %v251_v4  ;;  %v255_v10 = vld [vmem:[%s2117_s25 + $0x38] sm:$0xff]  ;;  %v256_v12 = vld [vmem:[%s2117_s25 + $0x40] sm:$0xff]  ;;  %vm3200_vm6 = vcmask 1047559   ;;  %s836_s0 = smul.u32 14, %s1881_s18  ;;  %vm3199_vm8 = vcmask 1045504  }
  0x81   : > { %v473_v11 = vmax.f32 %v472_v7, %v252_v5  ;;  %v257_v13 = vld [vmem:[%s2117_s25 + $0x48] sm:$0xff]  ;;  %v258_v14 = vld [vmem:[%s2117_s25 + $0x50] sm:$0xff]  ;;  %v259_v16 = vld [vmem:[%s2117_s25 + $0x58] sm:$0xff]  ;;  %s1590_s18 = sshll.u32 %s1885_s19, 6  ;;  %s1429_s12 = sshll.u32 %s2135_s8, 4  ;;  %s3110_s12 = int_to_ptr.vmem [resolvable:$true] %s1429_s12 }
  0x82   : > { %v486_v15 = vmax.f32 %v485_v9, %v253_v6  ;;  %v264_v17 = vld [vmem:[%s2117_s25 + $0x80] sm:$0xff]  ;;  %v265_v18 = vld [vmem:[%s2117_s25 + $0x88] sm:$0xff]  ;;  %v266_v20 = vld [vmem:[%s2117_s25 + $0x90] sm:$0xff]  ;;  %s1406_s26 = scalar_lea.sflag [#allocation4], %s219_s20  ;;  %s1771_s5 = scalar_lea.vmem %s3110_s12, 64 }
  0x83   : > { %v474_v19 = vmax.f32 %v473_v11, %v254_v8  ;;  %v267_v21 = vld [vmem:[%s2117_s25 + $0x98] sm:$0xff]  ;;  %v268_v22 = vld [vmem:[%s2117_s25 + $0xa0] sm:$0xff]  ;;  %v261_v25 = vld [vmem:[%s2117_s25 + $0x68] sm:$0xff]  ;;  %v498_v28 = vmax.f32 %v264_v17, %v266_v20  ;;  %p1772_p12 = scmp.ne.s32.totalorder %s3110_s12, %s1771_s5  ;;  %p3429_p3 = scmp.ne.s32.totalorder %s3237_s30, 0 }
  0x84   : > { %v487_v23 = vmax.f32 %v486_v15, %v255_v10  ;;  %v260_v24 = vld [vmem:[%s2117_s25 + $0x60] sm:$0xff]  ;;  %v269_v26 = vld [vmem:[%s2117_s25 + $0xa8] sm:$0xff]  ;;  %v511_v29 = vmax.f32 %v265_v18, %v267_v21  ;;  %v262_v30 = vld [vmem:[%s2117_s25 + $0x70] sm:$0xff]  ;;  %s1906_s19 = smov [#allocation7]  }
  0x85   : > { %v475_v27 = vmax.f32 %v474_v19, %v256_v12  ;;  %v270_v31 = vld [vmem:[%s2117_s25 + $0xb0] sm:$0xff]  ;;  %v271_v32 = vld [vmem:[%s2117_s25 + $0xb8] sm:$0xff]  ;;  %v272_v35 = vld [vmem:[%s2117_s25 + $0xc0] sm:$0xff]  ;;  %v499_v38 = vmax.f32 %v498_v28, %v268_v22  ;;  %p1773_p6 = pnand %p1772_p12, %p3429_p3  ;;  %s1775_s9 = sshll.u32 %s1906_s19, 4  ;;  %s1776_s9 = int_to_ptr.vmem [resolvable:$false] %s1775_s9 }
  0x86   : > { %v488_v33 = vmax.f32 %v487_v23, %v257_v13  ;;  %v263_v34 = vld [vmem:[%s2117_s25 + $0x78] sm:$0xff]  ;;  %v273_v36 = vld [vmem:[%s2117_s25 + $0xc8] sm:$0xff]  ;;  %v512_v39 = vmax.f32 %v511_v29, %v269_v26  ;;  %v274_v40 = vld [vmem:[%s2117_s25 + $0xd0] sm:$0xff]  ;;  %s1777_s15 = scalar_lea.vmem %s1776_s9, 128  ;;  %p1778_p0 = scmp.lt.s32.totalorder %s3110_s12, %s1776_s9 }
  0x87   : > { %v476_v37 = vmax.f32 %v475_v27, %v258_v14  ;;  %v275_v41 = vld [vmem:[%s2117_s25 + $0xd8] sm:$0xff]  ;;  %v280_v42 = vld [vmem:[%s2117_s25 + $0x100] sm:$0xff]  ;;  %v281_v44 = vld [vmem:[%s2117_s25 + $0x108] sm:$0xff]  ;;  %v500_v48 = vmax.f32 %v499_v38, %v270_v31  ;;  %p1774_p10 = pneg %p1773_p6  ;;  %p1779_p8 = scmp.lt.s32.totalorder %s1777_s15, %s1771_s5 }
  0x88   : > { %v489_v43 = vmax.f32 %v488_v33, %v259_v16  ;;  %v282_v45 = vld [vmem:[%s2117_s25 + $0x110] sm:$0xff]  ;;  %v283_v46 = vld [vmem:[%s2117_s25 + $0x118] sm:$0xff]  ;;  %v513_v49 = vmax.f32 %v512_v39, %v271_v32  ;;  %v276_v50 = vld [vmem:[%s2117_s25 + $0xe0] sm:$0xff] }
  0x89   : > { %v477_v47 = vmax.f32 %v476_v37, %v260_v24  ;;  %v284_v51 = vld [vmem:[%s2117_s25 + $0x120] sm:$0xff]  ;;  %v285_v52 = vld [vmem:[%s2117_s25 + $0x128] sm:$0xff]  ;;  %v524_v54 = vmax.f32 %v280_v42, %v282_v45  ;;  %v537_v55 = vmax.f32 %v281_v44, %v283_v46  ;;  %v286_v57 = vld [vmem:[%s2117_s25 + $0x130] sm:$0xff]  ;;  %v501_v60 = vmax.f32 %v500_v48, %v272_v35  ;;  %p1780_p11 = por %p1779_p8, %p1778_p0 }
  0x8a   : > { %v490_v53 = vmax.f32 %v489_v43, %v261_v25  ;;  %v277_v56 = vld [vmem:[%s2117_s25 + $0xe8] sm:$0xff]  ;;  %v287_v58 = vld [vmem:[%s2117_s25 + $0x138] sm:$0xff]  ;;  %v514_v61 = vmax.f32 %v513_v49, %v273_v36  ;;  %v278_v62 = vld [vmem:[%s2117_s25 + $0xf0] sm:$0xff] }
  0x8b   : > { %v478_v59 = vmax.f32 %v477_v47, %v262_v30  ;;  %v279_v63 = vld [vmem:[%s2117_s25 + $0xf8] sm:$0xff]  ;;  %v288_v0 = vld [vmem:[%s2117_s25 + $0x140] sm:$0xff]  ;;  %v525_v2 = vmax.f32 %v524_v54, %v284_v51  ;;  %v538_v3 = vmax.f32 %v537_v55, %v285_v52  ;;  %v289_v4 = vld [vmem:[%s2117_s25 + $0x148] sm:$0xff]  ;;  %v502_v8 = vmax.f32 %v501_v60, %v274_v40  ;;  %p1781_p13 = pnand %p1780_p11, %p1774_p10 }
  0x8c   : > { %v491_v1 = vmax.f32 %v490_v53, %v263_v34  ;;  %v290_v5 = vld [vmem:[%s2117_s25 + $0x150] sm:$0xff]  ;;  %v291_v6 = vld [vmem:[%s2117_s25 + $0x158] sm:$0xff]  ;;  %v515_v9 = vmax.f32 %v514_v61, %v275_v41  ;;  %v296_v10 = vld [vmem:[%s2117_s25 + $0x180] sm:$0xff] }
  0x8d   : > { %v479_v7 = vrot.slane %v478_v59, 4  ;;  %v297_v11 = vld [vmem:[%s2117_s25 + $0x188] sm:$0xff]  ;;  %v298_v12 = vld [vmem:[%s2117_s25 + $0x190] sm:$0xff]  ;;  %v526_v14 = vmax.f32 %v525_v2, %v286_v57  ;;  %v539_v15 = vmax.f32 %v538_v3, %v287_v58  ;;  %v299_v16 = vld [vmem:[%s2117_s25 + $0x198] sm:$0xff]  ;;  %v503_v20 = vmax.f32 %v502_v8, %v276_v50 }
  0x8e   : > { %v492_v13 = vrot.slane %v491_v1, 4  ;;  %v300_v17 = vld [vmem:[%s2117_s25 + $0x1a0] sm:$0xff]  ;;  %v301_v18 = vld [vmem:[%s2117_s25 + $0x1a8] sm:$0xff]  ;;  %v516_v21 = vmax.f32 %v515_v9, %v277_v56  ;;  %v550_v22 = vmax.f32 %v296_v10, %v298_v12  ;;  %v302_v23 = vld [vmem:[%s2117_s25 + $0x1b0] sm:$0xff]  ;;  %v563_v27 = vmax.f32 %v297_v11, %v299_v16 }
  0x8f   : > { %v480_v19 = vmax.f32 %v478_v59, %v479_v7  ;;  %v527_v25 = vmax.f32 %v526_v14, %v288_v0  ;;  %v540_v26 = vmax.f32 %v539_v15, %v289_v4  ;;  %v292_v28 = vld [vmem:[%s2117_s25 + $0x160] sm:$0xff]  ;;  %v293_v29 = vld [vmem:[%s2117_s25 + $0x168] sm:$0xff]  ;;  %v303_v30 = vld [vmem:[%s2117_s25 + $0x1b8] sm:$0xff]  ;;  %v504_v32 = vmax.f32 %v503_v20, %v278_v62 }
  0x90   : > { %v493_v24 = vmax.f32 %v491_v1, %v492_v13  ;;  %v517_v33 = vmax.f32 %v516_v21, %v279_v63  ;;  %v551_v34 = vmax.f32 %v550_v22, %v300_v17  ;;  %v304_v35 = vld [vmem:[%s2117_s25 + $0x1c0] sm:$0xff]  ;;  %v564_v39 = vmax.f32 %v563_v27, %v301_v18  ;;  %v294_v40 = vld [vmem:[%s2117_s25 + $0x170] sm:$0xff]  ;;  %v295_v41 = vld [vmem:[%s2117_s25 + $0x178] sm:$0xff] }
  0x91   : > { %v481_v31 = vrot.slane %v480_v19, 2  ;;  %v528_v37 = vmax.f32 %v527_v25, %v290_v5  ;;  %v541_v38 = vmax.f32 %v540_v26, %v291_v6  ;;  %v305_v42 = vld [vmem:[%s2117_s25 + $0x1c8] sm:$0xff]  ;;  %v505_v44 = vrot.slane %v504_v32, 4  ;;  %v306_v47 = vld [vmem:[%s2117_s25 + $0x1d0] sm:$0xff]  ;;  %v307_v52 = vld [vmem:[%s2117_s25 + $0x1d8] sm:$0xff] }
  0x92   : > { %v494_v36 = vrot.slane %v493_v24, 2  ;;  %v518_v45 = vrot.slane %v517_v33, 4  ;;  %v552_v46 = vmax.f32 %v551_v34, %v302_v23  ;;  %v565_v51 = vmax.f32 %v564_v39, %v303_v30  ;;  %v308_v57 = vld [vmem:[%s2117_s25 + $0x1e0] sm:$0xff]  ;;  %v314_v59 = vld [vmem:[%s2117_s25 + $0x210] sm:$0xff]  ;;  %v309_v0 = vld [vmem:[%s2117_s25 + $0x1e8] sm:$0xff] }
  0x93   : > { %v482_v43 = vmax.f32 %v480_v19, %v481_v31  ;;  %v529_v49 = vmax.f32 %v528_v37, %v292_v28  ;;  %v542_v50 = vmax.f32 %v541_v38, %v293_v29  ;;  %v506_v54 = vmax.f32 %v504_v32, %v505_v44  ;;  %v312_v58 = vld [vmem:[%s2117_s25 + $0x200] sm:$0xff]  ;;  %v313_v1 = vld [vmem:[%s2117_s25 + $0x208] sm:$0xff]  ;;  %v315_v2 = vld [vmem:[%s2117_s25 + $0x218] sm:$0xff] }
  0x94   : > { %v495_v48 = vmax.f32 %v493_v24, %v494_v36  ;;  %v519_v55 = vmax.f32 %v517_v33, %v518_v45  ;;  %v553_v56 = vmax.f32 %v552_v46, %v304_v35  ;;  %v566_v63 = vmax.f32 %v565_v51, %v305_v42  ;;  %v310_v7 = vld [vmem:[%s2117_s25 + $0x1f0] sm:$0xff]  ;;  %v316_v8 = vld [vmem:[%s2117_s25 + $0x220] sm:$0xff]  ;;  %v311_v13 = vld [vmem:[%s2117_s25 + $0x1f8] sm:$0xff] }
  0x95   : > { %v483_v53 = vrot.slane %v482_v43, 1  ;;  %v530_v61 = vmax.f32 %v529_v49, %v294_v40  ;;  %v543_v62 = vmax.f32 %v542_v50, %v295_v41  ;;  %v507_v4 = vrot.slane %v506_v54, 2  ;;  %v317_v14 = vld [vmem:[%s2117_s25 + $0x228] sm:$0xff]  ;;  %v318_v19 = vld [vmem:[%s2117_s25 + $0x230] sm:$0xff]  ;;  %v319_v24 = vld [vmem:[%s2117_s25 + $0x238] sm:$0xff] }
  0x96   : > { %v496_v60 = vrot.slane %v495_v48, 1  ;;  %v520_v5 = vrot.slane %v519_v55, 2  ;;  %v554_v6 = vmax.f32 %v553_v56, %v306_v47  ;;  %v567_v12 = vmax.f32 %v566_v63, %v307_v52  ;;  %v320_v25 = vld [vmem:[%s2117_s25 + $0x240] sm:$0xff]  ;;  %v329_v31 = vld [vmem:[%s2117_s25 + $0x288] sm:$0xff]  ;;  %v330_v32 = vld [vmem:[%s2117_s25 + $0x290] sm:$0xff] }
  0x97   : > { %v2205_v3 = vmax.f32 %v482_v43, %v483_v53  ;;  %v531_v10 = vrot.slane %v530_v61, 4  ;;  %v544_v11 = vrot.slane %v543_v62, 4  ;;  %v508_v15 = vmax.f32 %v506_v54, %v507_v4  ;;  %v328_v26 = vld [vmem:[%s2117_s25 + $0x280] sm:$0xff]  ;;  %v331_v33 = vld [vmem:[%s2117_s25 + $0x298] sm:$0xff]  ;;  %v321_v38 = vld [vmem:[%s2117_s25 + $0x248] sm:$0xff] }
  0x98   : > { %v2209_v9 = vmax.f32 %v495_v48, %v496_v60  ;;  %v521_v16 = vmax.f32 %v519_v55, %v520_v5  ;;  %v555_v17 = vmax.f32 %v554_v6, %v308_v57  ;;  %v576_v18 = vmax.f32 %v312_v58, %v314_v59  ;;  %v322_v43 = vld [vmem:[%s2117_s25 + $0x250] sm:$0xff]  ;;  %v332_v44 = vld [vmem:[%s2117_s25 + $0x2a0] sm:$0xff]  ;;  %v333_v45 = vld [vmem:[%s2117_s25 + $0x2a8] sm:$0xff] }
  0x99   : > { %v532_v20 = vmax.f32 %v530_v61, %v531_v10  ;;  %v545_v21 = vmax.f32 %v543_v62, %v544_v11  ;;  %v568_v22 = vmax.f32 %v567_v12, %v309_v0  ;;  %v589_v23 = vmax.f32 %v313_v1, %v315_v2  ;;  %v323_v50 = vld [vmem:[%s2117_s25 + $0x258] sm:$0xff]  ;;  %v324_v51 = vld [vmem:[%s2117_s25 + $0x260] sm:$0xff]  ;;  %v325_v52 = vld [vmem:[%s2117_s25 + $0x268] sm:$0xff] }
  0x9a   : > { %v509_v27 = vrot.slane %v508_v15, 1  ;;  %v522_v28 = vrot.slane %v521_v16, 1  ;;  %v556_v29 = vmax.f32 %v555_v17, %v310_v7  ;;  %v577_v30 = vmax.f32 %v576_v18, %v316_v8  ;;  %v334_v57 = vld [vmem:[%s2117_s25 + $0x2b0] sm:$0xff]  ;;  %v335_v58 = vld [vmem:[%s2117_s25 + $0x2b8] sm:$0xff]  ;;  %v344_v59 = vld [vmem:[%s2117_s25 + $0x300] sm:$0xff] }
  0x9b   : > { %v533_v34 = vrot.slane %v532_v20, 2  ;;  %v546_v35 = vrot.slane %v545_v21, 2  ;;  %v569_v36 = vmax.f32 %v568_v22, %v311_v13  ;;  %v590_v37 = vmax.f32 %v589_v23, %v317_v14  ;;  %v345_v0 = vld [vmem:[%s2117_s25 + $0x308] sm:$0xff]  ;;  %v346_v1 = vld [vmem:[%s2117_s25 + $0x310] sm:$0xff]  ;;  %v347_v2 = vld [vmem:[%s2117_s25 + $0x318] sm:$0xff] }
  0x9c   : > { %v2221_v39 = vmax.f32 %v508_v15, %v509_v27  ;;  %v2223_v40 = vmax.f32 %v521_v16, %v522_v28  ;;  %v557_v41 = vrot.slane %v556_v29, 4  ;;  %v578_v42 = vmax.f32 %v577_v30, %v318_v19  ;;  %v326_v8 = vld [vmem:[%s2117_s25 + $0x270] sm:$0xff]  ;;  %v336_v10 = vld [vmem:[%s2117_s25 + $0x2c0] sm:$0xff]  ;;  %v337_v11 = vld [vmem:[%s2117_s25 + $0x2c8] sm:$0xff] }
  0x9d   : > { %v534_v46 = vmax.f32 %v532_v20, %v533_v34  ;;  %v547_v47 = vmax.f32 %v545_v21, %v546_v35  ;;  %v570_v48 = vrot.slane %v569_v36, 4  ;;  %v591_v49 = vmax.f32 %v590_v37, %v319_v24  ;;  %v327_v16 = vld [vmem:[%s2117_s25 + $0x278] sm:$0xff]  ;;  %v348_v17 = vld [vmem:[%s2117_s25 + $0x320] sm:$0xff]  ;;  %v349_v18 = vld [vmem:[%s2117_s25 + $0x328] sm:$0xff] }
  0x9e   : > { %v558_v53 = vmax.f32 %v556_v29, %v557_v41  ;;  %v579_v54 = vmax.f32 %v578_v42, %v320_v25  ;;  %v602_v55 = vmax.f32 %v328_v26, %v330_v32  ;;  %v615_v56 = vmax.f32 %v329_v31, %v331_v33  ;;  %v338_v23 = vld [vmem:[%s2117_s25 + $0x2d0] sm:$0xff]  ;;  %v339_v24 = vld [vmem:[%s2117_s25 + $0x2d8] sm:$0xff]  ;;  %v340_v25 = vld [vmem:[%s2117_s25 + $0x2e0] sm:$0xff] }
  0x9f   : > { %v535_v60 = vrot.slane %v534_v46, 1  ;;  %v548_v61 = vrot.slane %v547_v47, 1  ;;  %v571_v62 = vmax.f32 %v569_v36, %v570_v48  ;;  %v592_v63 = vmax.f32 %v591_v49, %v321_v38  ;;  %v341_v30 = vld [vmem:[%s2117_s25 + $0x2e8] sm:$0xff]  ;;  %v350_v31 = vld [vmem:[%s2117_s25 + $0x330] sm:$0xff]  ;;  %v351_v32 = vld [vmem:[%s2117_s25 + $0x338] sm:$0xff] }
  0xa0   : > { %v559_v4 = vrot.slane %v558_v53, 2  ;;  %v580_v5 = vmax.f32 %v579_v54, %v322_v43  ;;  %v603_v6 = vmax.f32 %v602_v55, %v332_v44  ;;  %v616_v7 = vmax.f32 %v615_v56, %v333_v45  ;;  %v352_v37 = vld [vmem:[%s2117_s25 + $0x340] sm:$0xff]  ;;  %v362_v41 = vld [vmem:[%s2117_s25 + $0x390] sm:$0xff]  ;;  %v363_v48 = vld [vmem:[%s2117_s25 + $0x398] sm:$0xff] }
  0xa1   : > { %v2240_v12 = vmax.f32 %v534_v46, %v535_v60  ;;  %v2242_v13 = vmax.f32 %v547_v47, %v548_v61  ;;  %v572_v14 = vrot.slane %v571_v62, 2  ;;  %v593_v15 = vmax.f32 %v592_v63, %v323_v50  ;;  %v360_v38 = vld [vmem:[%s2117_s25 + $0x380] sm:$0xff]  ;;  %v353_v46 = vld [vmem:[%s2117_s25 + $0x348] sm:$0xff]  ;;  %v343_v54 = vld [vmem:[%s2117_s25 + $0x2f8] sm:$0xff] }
  0xa2   : > { %v560_v19 = vmax.f32 %v558_v53, %v559_v4  ;;  %v581_v20 = vmax.f32 %v580_v5, %v324_v51  ;;  %v604_v21 = vmax.f32 %v603_v6, %v334_v57  ;;  %v617_v22 = vmax.f32 %v616_v7, %v335_v58  ;;  %v361_v47 = vld [vmem:[%s2117_s25 + $0x388] sm:$0xff]  ;;  %v342_v53 = vld [vmem:[%s2117_s25 + $0x2f0] sm:$0xff]  ;;  %v364_v55 = vld [vmem:[%s2117_s25 + $0x3a0] sm:$0xff] }
  0xa3   : > { %v573_v26 = vmax.f32 %v571_v62, %v572_v14  ;;  %v594_v27 = vmax.f32 %v593_v15, %v325_v52  ;;  %v628_v28 = vmax.f32 %v344_v59, %v346_v1  ;;  %v641_v29 = vmax.f32 %v345_v0, %v347_v2  ;;  %v354_v60 = vld [vmem:[%s2117_s25 + $0x350] sm:$0xff]  ;;  %v355_v61 = vld [vmem:[%s2117_s25 + $0x358] sm:$0xff]  ;;  %v365_v62 = vld [vmem:[%s2117_s25 + $0x3a8] sm:$0xff] }
  0xa4   : > { %v561_v33 = vrot.slane %v560_v19, 1  ;;  %v582_v34 = vmax.f32 %v581_v20, %v326_v8  ;;  %v605_v35 = vmax.f32 %v604_v21, %v336_v10  ;;  %v618_v36 = vmax.f32 %v617_v22, %v337_v11  ;;  %v366_v4 = vld [vmem:[%s2117_s25 + $0x3b0] sm:$0xff]  ;;  %v356_v10 = vld [vmem:[%s2117_s25 + $0x360] sm:$0xff]  ;;  %v357_v11 = vld [vmem:[%s2117_s25 + $0x368] sm:$0xff] }
  0xa5   : > { %v574_v42 = vrot.slane %v573_v26, 1  ;;  %v595_v43 = vmax.f32 %v594_v27, %v327_v16  ;;  %v629_v44 = vmax.f32 %v628_v28, %v348_v17  ;;  %v642_v45 = vmax.f32 %v641_v29, %v349_v18  ;;  %v367_v14 = vld [vmem:[%s2117_s25 + $0x3b8] sm:$0xff] }
  0xa6   : > { %v2259_v49 = vmax.f32 %v560_v19, %v561_v33  ;;  %v583_v50 = vrot.slane %v582_v34, 4  ;;  %v606_v51 = vmax.f32 %v605_v35, %v338_v23  ;;  %v619_v52 = vmax.f32 %v618_v36, %v339_v24  ;;  %v368_v19 = vld [vmem:[%s2117_s25 + $0x3c0] sm:$0xff]  ;;  %v358_v24 = vld [vmem:[%s2117_s25 + $0x370] sm:$0xff]  ;;  %v371_v36 = vld [vmem:[%s2117_s25 + $0x3d8] sm:$0xff] }
  0xa7   : > { %v2264_v56 = vmax.f32 %v573_v26, %v574_v42  ;;  %v596_v57 = vrot.slane %v595_v43, 4  ;;  %v630_v58 = vmax.f32 %v629_v44, %v350_v31  ;;  %v643_v59 = vmax.f32 %v642_v45, %v351_v32  ;;  %v369_v26 = vld [vmem:[%s2117_s25 + $0x3c8] sm:$0xff]  ;;  %v370_v31 = vld [vmem:[%s2117_s25 + $0x3d0] sm:$0xff] }
  0xa8   : > { %v584_v63 = vmax.f32 %v582_v34, %v583_v50  ;;  %v607_v0 = vmax.f32 %v606_v51, %v340_v25  ;;  %v620_v1 = vmax.f32 %v619_v52, %v341_v30  ;;  %v654_v2 = vmax.f32 %v360_v38, %v362_v41  ;;  %v359_v25 = vld [vmem:[%s2117_s25 + $0x378] sm:$0xff] }
  0xa9   : > { %v597_v5 = vmax.f32 %v595_v43, %v596_v57  ;;  %v631_v6 = vmax.f32 %v630_v58, %v352_v37  ;;  %v644_v7 = vmax.f32 %v643_v59, %v353_v46  ;;  %v667_v8 = vmax.f32 %v361_v47, %v363_v48  ;;  %v372_v43 = vld [vmem:[%s2117_s25 + $0x3e0] sm:$0xff]  ;;  %v373_v48 = vld [vmem:[%s2117_s25 + $0x3e8] sm:$0xff] }
  0xaa   : > { %v585_v15 = vrot.slane %v584_v63, 2  ;;  %v608_v16 = vmax.f32 %v607_v0, %v342_v53  ;;  %v621_v17 = vmax.f32 %v620_v1, %v343_v54  ;;  %v655_v18 = vmax.f32 %v654_v2, %v364_v55  ;;  %v374_v54 = vld [vmem:[%s2117_s25 + $0x3f0] sm:$0xff] }
  0xab   : > { %v598_v20 = vrot.slane %v597_v5, 2  ;;  %v632_v21 = vmax.f32 %v631_v6, %v354_v60  ;;  %v645_v22 = vmax.f32 %v644_v7, %v355_v61  ;;  %v668_v23 = vmax.f32 %v667_v8, %v365_v62  ;;  %v375_v60 = vld [vmem:[%s2117_s25 + $0x3f8] sm:$0xff] }
  0xac   : > { %v586_v27 = vmax.f32 %v584_v63, %v585_v15  ;;  %v609_v28 = vrot.slane %v608_v16, 4  ;;  %v622_v29 = vrot.slane %v621_v17, 4  ;;  %v656_v30 = vmax.f32 %v655_v18, %v366_v4 }
  0xad   : > { %v599_v32 = vmax.f32 %v597_v5, %v598_v20  ;;  %v633_v33 = vmax.f32 %v632_v21, %v356_v10  ;;  %v646_v34 = vmax.f32 %v645_v22, %v357_v11  ;;  %v669_v35 = vmax.f32 %v668_v23, %v367_v14 }
  0xae   : > { %v587_v37 = vrot.slane %v586_v27, 1  ;;  %v610_v38 = vmax.f32 %v608_v16, %v609_v28  ;;  %v623_v41 = vmax.f32 %v621_v17, %v622_v29  ;;  %v657_v42 = vmax.f32 %v656_v30, %v368_v19  ;;  %v377_v28 = vld [vmem:[%s2117_s25 + $0x408] sm:$0xff]  ;;  %v378_v29 = vld [vmem:[%s2117_s25 + $0x410] sm:$0xff]  ;;  %v379_v30 = vld [vmem:[%s2117_s25 + $0x418] sm:$0xff] }
  0xaf   : > { %v600_v44 = vrot.slane %v599_v32, 1  ;;  %v634_v45 = vmax.f32 %v633_v33, %v358_v24  ;;  %v647_v46 = vmax.f32 %v646_v34, %v359_v25  ;;  %v670_v47 = vmax.f32 %v669_v35, %v369_v26  ;;  %v376_v25 = vld [vmem:[%s2117_s25 + $0x400] sm:$0xff] }
  0xb0   : > { %v2281_v50 = vmax.f32 %v586_v27, %v587_v37  ;;  %v611_v51 = vrot.slane %v610_v38, 2  ;;  %v624_v52 = vrot.slane %v623_v41, 2  ;;  %v658_v53 = vmax.f32 %v657_v42, %v370_v31  ;;  %v380_v35 = vld [vmem:[%s2117_s25 + $0x420] sm:$0xff]  ;;  %v394_v37 = vld [vmem:[%s2117_s25 + $0x490] sm:$0xff] }
  0xb1   : > { %v2284_v55 = vmax.f32 %v599_v32, %v600_v44  ;;  %v635_v57 = vrot.slane %v634_v45, 4  ;;  %v648_v58 = vrot.slane %v647_v46, 4  ;;  %v671_v59 = vmax.f32 %v670_v47, %v371_v36  ;;  %v392_v36 = vld [vmem:[%s2117_s25 + $0x480] sm:$0xff]  ;;  %v393_v44 = vld [vmem:[%s2117_s25 + $0x488] sm:$0xff] }
  0xb2   : > { %v612_v61 = vmax.f32 %v610_v38, %v611_v51  ;;  %v625_v62 = vmax.f32 %v623_v41, %v624_v52  ;;  %v659_v63 = vmax.f32 %v658_v53, %v372_v43  ;;  %v878_v0 = vsel %vm3206_vm0, %v2221_v39, %v2205_v3  ;;  %v381_v43 = vld [vmem:[%s2117_s25 + $0x428] sm:$0xff]  ;;  %v396_v51 = vld [vmem:[%s2117_s25 + $0x4a0] sm:$0xff] }
  0xb3   : > { %v636_v1 = vmax.f32 %v634_v45, %v635_v57  ;;  %v649_v2 = vmax.f32 %v647_v46, %v648_v58  ;;  %v672_v4 = vmax.f32 %v671_v59, %v373_v48  ;;  %v880_v5 = vsel %vm3205_vm1, %v2240_v12, %v878_v0  ;;  %v395_v45 = vld [vmem:[%s2117_s25 + $0x498] sm:$0xff]  ;;  %v397_v52 = vld [vmem:[%s2117_s25 + $0x4a8] sm:$0xff]  ;;  %v408_v53 = vld [vmem:[%s2117_s25 + $0x500] sm:$0xff] }
  0xb4   : > { %v613_v6 = vrot.slane %v612_v61, 1  ;;  %v626_v7 = vrot.slane %v625_v62, 1  ;;  %v660_v8 = vmax.f32 %v659_v63, %v374_v54  ;;  %v882_v10 = vsel %vm3204_vm2, %v2259_v49, %v880_v5  ;;  %v409_v57 = vld [vmem:[%s2117_s25 + $0x508] sm:$0xff]  ;;  %v410_v58 = vld [vmem:[%s2117_s25 + $0x510] sm:$0xff]  ;;  %v411_v59 = vld [vmem:[%s2117_s25 + $0x518] sm:$0xff] }
  0xb5   : > { %v637_v11 = vrot.slane %v636_v1, 2  ;;  %v650_v14 = vrot.slane %v649_v2, 2  ;;  %v673_v15 = vmax.f32 %v672_v4, %v375_v60  ;;  %v884_v16 = vsel %vm3203_vm3, %v2281_v50, %v882_v10  ;;  %v383_v4 = vld [vmem:[%s2117_s25 + $0x438] sm:$0xff]  ;;  %v398_v5 = vld [vmem:[%s2117_s25 + $0x4b0] sm:$0xff]  ;;  %v412_v10 = vld [vmem:[%s2117_s25 + $0x520] sm:$0xff] }
  0xb6   : > { %v2296_v17 = vmax.f32 %v612_v61, %v613_v6  ;;  %v2298_v18 = vmax.f32 %v625_v62, %v626_v7  ;;  %v661_v19 = vrot.slane %v660_v8, 4  ;;  %v891_v20 = vsel %vm3206_vm0, %v2223_v40, %v2209_v9 }
  0xb7   : > { %v638_v21 = vmax.f32 %v636_v1, %v637_v11  ;;  %v651_v22 = vmax.f32 %v649_v2, %v650_v14  ;;  %v674_v23 = vrot.slane %v673_v15, 4  ;;  %v892_v24 = vsel %vm3205_vm1, %v2242_v13, %v891_v20  ;;  %v382_v2 = vld [vmem:[%s2117_s25 + $0x430] sm:$0xff]  ;;  %v413_v11 = vld [vmem:[%s2117_s25 + $0x528] sm:$0xff]  ;;  %v384_v20 = vld [vmem:[%s2117_s25 + $0x440] sm:$0xff] }
  0xb8   : > { %v662_v26 = vmax.f32 %v660_v8, %v661_v19  ;;  %v893_v27 = vsel %vm3204_vm2, %v2264_v56, %v892_v24  ;;  %v886_v41 = vsel %vm3202_vm4, %v2296_v17, %v884_v16  ;;  %v680_v60 = vmax.f32 %v376_v25, %v378_v29  ;;  %v399_v8 = vld [vmem:[%s2117_s25 + $0x4b8] sm:$0xff]  ;;  %v401_v29 = vld [vmem:[%s2117_s25 + $0x4c8] sm:$0xff] }
  0xb9   : > { %v639_v31 = vrot.slane %v638_v21, 1  ;;  %v652_v32 = vrot.slane %v651_v22, 1  ;;  %v675_v33 = vmax.f32 %v673_v15, %v674_v23  ;;  %v894_v34 = vsel %vm3203_vm3, %v2284_v55, %v893_v27  ;;  %v386_v27 = vld [vmem:[%s2117_s25 + $0x450] sm:$0xff] }
  0xba   : > { %v663_v38 = vrot.slane %v662_v26, 2  ;;  %v895_v42 = vsel %vm3202_vm4, %v2298_v18, %v894_v34  ;;  %v693_v61 = vmax.f32 %v377_v28, %v379_v30  ;;  %v706_v62 = vmax.f32 %v392_v36, %v394_v37  ;;  %v387_v28 = vld [vmem:[%s2117_s25 + $0x458] sm:$0xff]  ;;  %v388_v34 = vld [vmem:[%s2117_s25 + $0x460] sm:$0xff] }
  0xbb   : > { %v2323_v46 = vmax.f32 %v638_v21, %v639_v31  ;;  %v2325_v47 = vmax.f32 %v651_v22, %v652_v32  ;;  %v676_v48 = vrot.slane %v675_v33, 2  ;;  %v719_v6 = vmax.f32 %v393_v44, %v395_v45  ;;  %v385_v21 = vld [vmem:[%s2117_s25 + $0x448] sm:$0xff]  ;;  %v400_v22 = vld [vmem:[%s2117_s25 + $0x4c0] sm:$0xff]  ;;  %v403_v36 = vld [vmem:[%s2117_s25 + $0x4d8] sm:$0xff] }
  0xbc   : > { %v664_v54 = vmax.f32 %v662_v26, %v663_v38  ;;  %v681_v14 = vmax.f32 %v680_v60, %v380_v35  ;;  %v694_v15 = vmax.f32 %v693_v61, %v381_v43  ;;  %v707_v16 = vmax.f32 %v706_v62, %v396_v51  ;;  %v402_v35 = vld [vmem:[%s2117_s25 + $0x4d0] sm:$0xff]  ;;  %v389_v43 = vld [vmem:[%s2117_s25 + $0x468] sm:$0xff]  ;;  %v415_v45 = vld [vmem:[%s2117_s25 + $0x538] sm:$0xff] }
  0xbd   : > { %v677_v63 = vmax.f32 %v675_v33, %v676_v48  ;;  %v888_v0 = vsel %vm3201_vm5, %v2323_v46, %v886_v41  ;;  %v896_v1 = vsel %vm3201_vm5, %v2325_v47, %v895_v42  ;;  %v720_v23 = vmax.f32 %v719_v6, %v397_v52  ;;  %v414_v44 = vld [vmem:[%s2117_s25 + $0x530] sm:$0xff]  ;;  %v424_v48 = vld [vmem:[%s2117_s25 + $0x580] sm:$0xff]  ;;  %v427_v60 = vld [vmem:[%s2117_s25 + $0x598] sm:$0xff] }
  0xbe   : > { %v665_v7 = vrot.slane %v664_v54, 1  ;;  %v732_v24 = vmax.f32 %v408_v53, %v410_v58  ;;  %v745_v25 = vmax.f32 %v409_v57, %v411_v59  ;;  %v682_v30 = vmax.f32 %v681_v14, %v382_v2  ;;  %v390_v57 = vld [vmem:[%s2117_s25 + $0x470] sm:$0xff]  ;;  %v425_v58 = vld [vmem:[%s2117_s25 + $0x588] sm:$0xff]  ;;  %v416_v2 = vld [vmem:[%s2117_s25 + $0x540] sm:$0xff] }
  0xbf   : > { %v678_v19 = vrot.slane %v677_v63, 1  ;;  %v695_v31 = vmax.f32 %v694_v15, %v383_v4  ;;  %v708_v32 = vmax.f32 %v707_v16, %v398_v5  ;;  %v721_v37 = vmax.f32 %v720_v23, %v399_v8  ;;  %v426_v59 = vld [vmem:[%s2117_s25 + $0x590] sm:$0xff]  ;;  %v417_v5 = vld [vmem:[%s2117_s25 + $0x548] sm:$0xff]  ;;  %v391_v14 = vld [vmem:[%s2117_s25 + $0x478] sm:$0xff] }
  0xc0   : > { %v2346_v26 = vmax.f32 %v664_v54, %v665_v7  ;;  %v733_v38 = vmax.f32 %v732_v24, %v412_v10  ;;  %v746_v41 = vmax.f32 %v745_v25, %v413_v11  ;;  %v683_v51 = vmax.f32 %v682_v30, %v384_v20  ;;  %v429_v6 = vld [vmem:[%s2117_s25 + $0x5a8] sm:$0xff]  ;;  %v418_v15 = vld [vmem:[%s2117_s25 + $0x550] sm:$0xff]  ;;  %v431_v24 = vld [vmem:[%s2117_s25 + $0x5b8] sm:$0xff] }
  0xc1   : > { %v2351_v33 = vmax.f32 %v677_v63, %v678_v19  ;;  %v696_v52 = vmax.f32 %v695_v31, %v385_v21  ;;  %v709_v53 = vmax.f32 %v708_v32, %v400_v22  ;;  %v722_v61 = vmax.f32 %v721_v37, %v401_v29  ;;  %v404_v63 = vld [vmem:[%s2117_s25 + $0x4e0] sm:$0xff]  ;;  %v419_v22 = vld [vmem:[%s2117_s25 + $0x558] sm:$0xff]  ;;  %v430_v23 = vld [vmem:[%s2117_s25 + $0x5b0] sm:$0xff] }
  0xc2   : > { %v2358_v42 = vsel %vm3200_vm6, %v2346_v26, %v888_v0  ;;  %v405_v0 = vld [vmem:[%s2117_s25 + $0x4e8] sm:$0xff]  ;;  %v684_v4 = vmax.f32 %v683_v51, %v386_v27  ;;  %v734_v11 = vmax.f32 %v733_v38, %v414_v44  ;;  %v747_v19 = vmax.f32 %v746_v41, %v415_v45  ;;  %v406_v30 = vld [vmem:[%s2117_s25 + $0x4f0] sm:$0xff]  ;;  %v407_v31 = vld [vmem:[%s2117_s25 + $0x4f8] sm:$0xff] }
  0xc3   : > { %v2366_v54 = vsel %vm3200_vm6, %v2351_v33, %v896_v1  ;;  %v428_v1 = vld [vmem:[%s2117_s25 + $0x5a0] sm:$0xff]  ;;  %v697_v7 = vmax.f32 %v696_v52, %v387_v28  ;;  %v710_v8 = vmax.f32 %v709_v53, %v402_v35  ;;  %v723_v10 = vmax.f32 %v722_v61, %v403_v36  ;;  %v421_v38 = vld [vmem:[%s2117_s25 + $0x568] sm:$0xff]  ;;  %v423_v53 = vld [vmem:[%s2117_s25 + $0x578] sm:$0xff] }
  0xc4   : > { %v1003_v62 = vmax.f32 %v2358_v42, %v2366_v54  ;;  %v685_v16 = vmax.f32 %v684_v4, %v388_v34  ;;  %v758_v20 = vmax.f32 %v424_v48, %v426_v59  ;;  %v771_v21 = vmax.f32 %v425_v58, %v427_v60  ;;  %v420_v32 = vld [vmem:[%s2117_s25 + $0x560] sm:$0xff]  ;;  %v433_v44 = vld [vmem:[%s2117_s25 + $0x5c8] sm:$0xff]  ;;  %v422_v48 = vld [vmem:[%s2117_s25 + $0x570] sm:$0xff] }
  0xc5   : > { %v698_v25 = vmax.f32 %v697_v7, %v389_v43  ;;  %v711_v27 = vmax.f32 %v710_v8, %v404_v63  ;;  %v724_v28 = vmax.f32 %v723_v10, %v405_v0  ;;  %v735_v29 = vmax.f32 %v734_v11, %v416_v2  ;;  %v432_v41 = vld [vmem:[%s2117_s25 + $0x5c0] sm:$0xff]  ;;  %v434_v58 = vld [vmem:[%s2117_s25 + $0x5d0] sm:$0xff]  ;;  %v435_v59 = vld [vmem:[%s2117_s25 + $0x5d8] sm:$0xff] }
  0xc6   : > { %1004 = vmax.xlane.f32.xlu0 %v1003_v62  ;;  %v686_v34 = vmax.f32 %v685_v16, %v390_v57  ;;  %v748_v35 = vmax.f32 %v747_v19, %v417_v5  ;;  %v759_v36 = vmax.f32 %v758_v20, %v428_v1  ;;  %v772_v37 = vmax.f32 %v771_v21, %v429_v6  ;;  %v436_v5 = vld [vmem:[%s2117_s25 + $0x5e0] sm:$0xff]  ;;  %v437_v1 = vld [vmem:[%s2117_s25 + $0x5e8] sm:$0xff]  ;;  %v438_v11 = vld [vmem:[%s2117_s25 + $0x5f0] sm:$0xff] }
  0xc7   : > { %v736_v45 = vmax.f32 %v735_v29, %v418_v15  ;;  %v699_v60 = vmax.f32 %v698_v25, %v391_v14  ;;  %v712_v57 = vmax.f32 %v711_v27, %v406_v30  ;;  %v725_v61 = vmax.f32 %v724_v28, %v407_v31  ;;  %v439_v15 = vld [vmem:[%s2117_s25 + $0x5f8] sm:$0xff]  ;;  %v441_v25 = vld [vmem:[%s2117_s25 + $0x608] sm:$0xff]  ;;  %v442_v31 = vld [vmem:[%s2117_s25 + $0x610] sm:$0xff] }
  0xc8   : > { %v749_v43 = vmax.f32 %v748_v35, %v419_v22  ;;  %v760_v51 = vmax.f32 %v759_v36, %v430_v23  ;;  %v773_v52 = vmax.f32 %v772_v37, %v431_v24  ;;  %v687_v63 = vrot.slane %v686_v34, 4  ;;  %v440_v24 = vld [vmem:[%s2117_s25 + $0x600] sm:$0xff]  ;;  %v457_v36 = vld [vmem:[%s2117_s25 + $0x688] sm:$0xff]  ;;  %v458_v37 = vld [vmem:[%s2117_s25 + $0x690] sm:$0xff] }
  0xc9   : > { %v737_v62 = vmax.f32 %v736_v45, %v420_v32  ;;  %v700_v14 = vrot.slane %v699_v60, 4  ;;  %v713_v16 = vrot.slane %v712_v57, 4  ;;  %v726_v20 = vrot.slane %v725_v61, 4  ;;  %v443_v32 = vld [vmem:[%s2117_s25 + $0x618] sm:$0xff] }
  0xca   : > { %v750_v0 = vmax.f32 %v749_v43, %v421_v38  ;;  %v761_v2 = vmax.f32 %v760_v51, %v432_v41  ;;  %v774_v4 = vmax.f32 %v773_v52, %v433_v44  ;;  %v688_v19 = vmax.f32 %v686_v34, %v687_v63  ;;  %v456_v34 = vld [vmem:[%s2117_s25 + $0x680] sm:$0xff]  ;;  %v459_v38 = vld [vmem:[%s2117_s25 + $0x698] sm:$0xff] }
  0xcb   : > { %v738_v6 = vmax.f32 %v737_v62, %v422_v48  ;;  %v3211_v23 = vlaneseq  ;;  %v714_v35 = vmax.f32 %v712_v57, %v713_v16  ;;  %v701_v44 = vmax.f32 %v699_v60, %v700_v14  ;;  %v444_v51 = vld [vmem:[%s2117_s25 + $0x620] sm:$0xff]  ;;  %v446_v60 = vld [vmem:[%s2117_s25 + $0x630] sm:$0xff] }
  0xcc   : > { %v751_v7 = vmax.f32 %v750_v0, %v423_v53  ;;  %v762_v8 = vmax.f32 %v761_v2, %v434_v58  ;;  %v775_v10 = vmax.f32 %v774_v4, %v435_v59  ;;  %v689_v41 = vrot.slane %v688_v19, 2  ;;  %v445_v53 = vld [vmem:[%s2117_s25 + $0x628] sm:$0xff]  ;;  %v460_v58 = vld [vmem:[%s2117_s25 + $0x6a0] sm:$0xff] }
  0xcd   : > { %v739_v27 = vrot.slane %v738_v6, 4  ;;  %v727_v45 = vmax.f32 %v725_v61, %v726_v20  ;;  %v2409_v48 = vshrl.u32 %v3211_v23, 7  ;;  %v2411_v43 = vstv %s836_s0  ;;  %v461_v59 = vld [vmem:[%s2117_s25 + $0x6a8] sm:$0xff]  ;;  %v448_v16 = vld [vmem:[%s2117_s25 + $0x640] sm:$0xff] }
  0xce   : > { %v763_v21 = vmax.f32 %v762_v8, %v436_v5  ;;  %v776_v22 = vmax.f32 %v775_v10, %v437_v1  ;;  %v752_v28 = vrot.slane %v751_v7, 4  ;;  %v784_v0 = vmax.f32 %v440_v24, %v442_v31  ;;  %v447_v1 = vld [vmem:[%s2117_s25 + $0x638] sm:$0xff]  ;;  %v462_v8 = vld [vmem:[%s2117_s25 + $0x6b0] sm:$0xff]  ;;  %v449_v24 = vld [vmem:[%s2117_s25 + $0x648] sm:$0xff] }
  0xcf   : > { %v740_v57 = vmax.f32 %v738_v6, %v739_v27  ;;  %v715_v61 = vrot.slane %v714_v35, 2  ;;  %v797_v2 = vmax.f32 %v441_v25, %v443_v32  ;;  %v810_v4 = vmax.f32 %v456_v34, %v458_v37  ;;  %v463_v10 = vld [vmem:[%s2117_s25 + $0x6b8] sm:$0xff]  ;;  %v464_v25 = vld [vmem:[%s2117_s25 + $0x6c0] sm:$0xff]  ;;  %v465_v27 = vld [vmem:[%s2117_s25 + $0x6c8] sm:$0xff] }
  0xd0   : > { %v764_v29 = vmax.f32 %v763_v21, %v438_v11  ;;  %v777_v30 = vmax.f32 %v776_v22, %v439_v15  ;;  %v753_v62 = vmax.f32 %v751_v7, %v752_v28  ;;  %v823_v5 = vmax.f32 %v457_v36, %v459_v38  ;;  %v450_v34 = vld [vmem:[%s2117_s25 + $0x650] sm:$0xff] }
  0xd1   : > { %v690_v11 = vmax.f32 %v688_v19, %v689_v41  ;;  %v702_v15 = vrot.slane %v701_v44, 2  ;;  %v728_v14 = vrot.slane %v727_v45, 2  ;;  %v785_v6 = vmax.f32 %v784_v0, %v444_v51  ;;  %v451_v41 = vld [vmem:[%s2117_s25 + $0x658] sm:$0xff]  ;;  %v466_v51 = vld [vmem:[%s2117_s25 + $0x6d0] sm:$0xff] }
  0xd2   : > { %v765_v52 = vrot.slane %v764_v29, 4  ;;  %v778_v63 = vrot.slane %v777_v30, 4  ;;  %v798_v20 = vmax.f32 %v797_v2, %v445_v53  ;;  %v811_v21 = vmax.f32 %v810_v4, %v460_v58  ;;  %v452_v2 = vld [vmem:[%s2117_s25 + $0x660] sm:$0xff] }
  0xd3   : > { %v824_v22 = vmax.f32 %v823_v5, %v461_v59  ;;  %v741_v28 = vrot.slane %v740_v57, 2  ;;  %v754_v31 = vrot.slane %v753_v62, 2  ;;  %v786_v19 = vmax.f32 %v785_v6, %v446_v60  ;;  %v453_v60 = vld [vmem:[%s2117_s25 + $0x668] sm:$0xff] }
  0xd4   : > { %v766_v7 = vmax.f32 %v764_v29, %v765_v52  ;;  %v779_v32 = vmax.f32 %v777_v30, %v778_v63  ;;  %v716_v36 = vmax.f32 %v714_v35, %v715_v61  ;;  %v799_v37 = vmax.f32 %v798_v20, %v447_v1  ;;  %v467_v52 = vld [vmem:[%s2117_s25 + $0x6d8] sm:$0xff]  ;;  %v468_v61 = vld [vmem:[%s2117_s25 + $0x6e0] sm:$0xff]  ;;  %v469_v5 = vld [vmem:[%s2117_s25 + $0x6e8] sm:$0xff] }
  0xd5   : > { %v812_v29 = vmax.f32 %v811_v21, %v462_v8  ;;  %v825_v38 = vmax.f32 %v824_v22, %v463_v10  ;;  %v691_v53 = vrot.slane %v690_v11, 1  ;;  %v703_v58 = vmax.f32 %v701_v44, %v702_v15  ;;  %v454_v20 = vld [vmem:[%s2117_s25 + $0x670] sm:$0xff]  ;;  %v471_v22 = vld [vmem:[%s2117_s25 + $0x6f8] sm:$0xff] }
  0xd6   : > { %v729_v59 = vmax.f32 %v727_v45, %v728_v14  ;;  %v787_v0 = vmax.f32 %v786_v19, %v448_v16  ;;  %v767_v4 = vrot.slane %v766_v7, 2  ;;  %v800_v30 = vmax.f32 %v799_v37, %v449_v24  ;;  %v455_v14 = vld [vmem:[%s2117_s25 + $0x678] sm:$0xff]  ;;  %v470_v16 = vld [vmem:[%s2117_s25 + $0x6f0] sm:$0xff]  ;;  %s3108_s25 = scalar_lea.hbm %s3186_s2, %s1590_s18 }
  0xd7   : > { %v813_v35 = vmax.f32 %v812_v29, %v464_v25  ;;  %v826_v63 = vmax.f32 %v825_v38, %v465_v27  ;;  %v742_v1 = vmax.f32 %v740_v57, %v741_v28  ;;  %v755_v8 = vmax.f32 %v753_v62, %v754_v31 }
  0xd8   : > { %v780_v10 = vrot.slane %v779_v32, 2  ;;  %v788_v6 = vmax.f32 %v787_v0, %v450_v34  ;;  %v717_v21 = vrot.slane %v716_v36, 1  ;;  %v801_v44 = vmax.f32 %v800_v30, %v451_v41 }
  0xd9   : > { %v814_v45 = vmax.f32 %v813_v35, %v466_v51  ;;  %v827_v15 = vmax.f32 %v826_v63, %v467_v52  ;;  %v2437_v24 = vmax.f32 %v690_v11, %v691_v53  ;;  %v704_v25 = vrot.slane %v703_v58, 1 }
  0xda   : > { %v730_v19 = vrot.slane %v729_v59, 1  ;;  %v789_v27 = vmax.f32 %v788_v6, %v452_v2  ;;  %v768_v37 = vmax.f32 %v766_v7, %v767_v4  ;;  %v802_v29 = vmax.f32 %v801_v44, %v453_v60 }
  0xdb   : > { %v815_v38 = vmax.f32 %v814_v45, %v468_v61  ;;  %v828_v57 = vmax.f32 %v827_v15, %v469_v5  ;;  %v743_v62 = vrot.slane %v742_v1, 1  ;;  %v756_v28 = vrot.slane %v755_v8, 1 }
  0xdc   : > { %v781_v31 = vmax.f32 %v779_v32, %v780_v10  ;;  %v790_v34 = vmax.f32 %v789_v27, %v454_v20  ;;  %v2439_v0 = vmax.f32 %v716_v36, %v717_v21  ;;  %v803_v41 = vmax.f32 %v802_v29, %v455_v14 }
  0xdd   : > { %v816_v51 = vmax.f32 %v815_v38, %v470_v16  ;;  %v829_v52 = vmax.f32 %v828_v57, %v471_v22  ;;  %v839_v30 = vadd.s32 8, %v2409_v48  ;;  %v2442_v11 = vmax.f32 %v703_v58, %v704_v25 }
  0xde   : > { %v2444_v53 = vmax.f32 %v729_v59, %v730_v19  ;;  %v791_v2 = vrot.slane %v790_v34, 4  ;;  %v769_v7 = vrot.slane %v768_v37, 1  ;;  %v804_v4 = vrot.slane %v803_v41, 4 }
  0xdf   : > { %v817_v35 = vrot.slane %v816_v51, 4  ;;  %v830_v63 = vrot.slane %v829_v52, 4  ;;  %v2446_v60 = vmax.f32 %v742_v1, %v743_v62  ;;  %v2448_v32 = vmax.f32 %v755_v8, %v756_v28 }
  0xe0   : > { %v782_v36 = vrot.slane %v781_v31, 1  ;;  %v792_v61 = vmax.f32 %v790_v34, %v791_v2  ;;  %v805_v5 = vmax.f32 %v803_v41, %v804_v4  ;;  %v898_v58 = vsel %vm3206_vm0, %v2439_v0, %v2437_v24 }
  0xe1   : > { %v818_v10 = vmax.f32 %v816_v51, %v817_v35  ;;  %v831_v6 = vmax.f32 %v829_v52, %v830_v63  ;;  %v841_v59 = vadd.s32 %v2411_v43, %v2409_v48  ;;  %v903_v1 = vsel %vm3206_vm0, %v2444_v53, %v2442_v11 }
  0xe2   : > { %v793_v20 = vrot.slane %v792_v61, 2  ;;  %v2458_v21 = vmax.f32 %v768_v37, %v769_v7  ;;  %v806_v8 = vrot.slane %v805_v5, 2  ;;  %v842_v15 = vadd.s32 %v2411_v43, %v839_v30 }
  0xe3   : > { %v819_v44 = vrot.slane %v818_v10, 2  ;;  %v832_v45 = vrot.slane %v831_v6, 2  ;;  %v2461_v14 = vmax.f32 %v781_v31, %v782_v36  ;;  %v899_v22 = vsel %vm3205_vm1, %v2446_v60, %v898_v58 }
  0xe4   : > { %v794_v16 = vmax.f32 %v792_v61, %v793_v20  ;;  %v807_v25 = vmax.f32 %v805_v5, %v806_v8  ;;  %v904_v29 = vsel %vm3205_vm1, %v2448_v32, %v903_v1  ;;  %vm843_vm7 = vcmp.lt.s32.totalorder %v841_v59, 21 }
  0xe5   : > { %v820_v19 = vmax.f32 %v818_v10, %v819_v44  ;;  %v833_v27 = vmax.f32 %v831_v6, %v832_v45  ;;  %v900_v43 = vsel %vm3204_vm2, %v2458_v21, %v899_v22  ;;  %v905_v31 = vsel %vm3204_vm2, %v2461_v14, %v904_v29 }
  0xe6   : > { %v795_v37 = vrot.slane %v794_v16, 1  ;;  %v808_v38 = vrot.slane %v807_v25, 1  ;;  %vm844_vm9 = vcmp.lt.s32.totalorder %v842_v15, 21  ;;  %v912_v52 = vsel %vm843_vm7, %v2358_v42, -inf }
  0xe7   : > { %v821_v57 = vrot.slane %v820_v19, 1  ;;  %v834_v62 = vrot.slane %v833_v27, 1  ;;  %v933_v30 = vsel %vm843_vm7, -inf, %v2358_v42  ;;  %v913_v7 = vsel %vm843_vm7, %v2366_v54, -inf }
  0xe8   : > { %v2469_v28 = vmax.f32 %v794_v16, %v795_v37  ;;  %v2473_v34 = vmax.f32 %v807_v25, %v808_v38  ;;  %v934_v4 = vsel %vm843_vm7, -inf, %v2366_v54  ;;  %v3214_v22 = vsub.s32 0, %v2409_v48 }
  0xe9   : > { %v2475_v41 = vmax.f32 %v820_v19, %v821_v57  ;;  %v2477_v51 = vmax.f32 %v833_v27, %v834_v62  ;;  %v3213_v25 = vsub.s32 1, %v2409_v48  ;;  %v1000_v19 = vld [vmem:[#allocation2] ss:$2 sm:$0x3] }
  0xea   : > { %v901_v2 = vsel %vm3203_vm3, %v2469_v28, %v900_v43  ;;  %v906_v63 = vsel %vm3203_vm3, %v2473_v34, %v905_v31  ;;  %v2520_v43 = vrot.slane %v1000_v19, %v3214_v22 }
  0xeb   : > { %v902_v35 = vsel %vm3202_vm4, %v2475_v41, %v901_v2  ;;  %v907_v36 = vsel %vm3202_vm4, %v2477_v51, %v906_v63  ;;  %v2524_v31 = vrot.slane %v1000_v19, %v3213_v25 }
  0xec   : > { %v914_v61 = vsel %vm844_vm9, %v902_v35, -inf  ;;  %v935_v42 = vsel %vm844_vm9, -inf, %v902_v35  ;;  %v1006_v5 = vsel %vm3199_vm8, %v902_v35, -inf  ;;  %v915_v10 = vsel %vm844_vm9, %v907_v36, -inf }
  0xed   : > { %v917_v6 = vsel %vm3199_vm8, %v914_v61, -inf  ;;  %v936_v58 = vsel %vm844_vm9, -inf, %v907_v36  ;;  %v937_v59 = vsel %vm3199_vm8, %v935_v42, -inf  ;;  %v925_v54 = vsel %vm3199_vm8, %v915_v10, -inf }
  0xee   : > { %v945_v20 = vsel %vm3199_vm8, %v936_v58, -inf  ;;  %v1007_v1 = vsel %vm3199_vm8, %v907_v36, -inf  ;;  %v2501_v8 = vmax.f32 %v912_v52, %v917_v6  ;;  %v2503_v44 = vmax.f32 %v913_v7, %v925_v54 }
  0xef   : > { %v2505_v45 = vmax.f32 %v934_v4, %v945_v20  ;;  %v1008_v15 = vmax.f32 %v1006_v5, %v1007_v1  ;;  %v2507_v16 = vmax.f32 %v933_v30, %v937_v59 }
  0xf1   : > { %3252 = vst [vmem:[#allocation16_spill] sm:$0xff] %v2507_v16  ;;  %1009 = vmax.xlane.f32.xlu0 %v1008_v15 }
 0x153   : > { %v2511_v27 = vpop.xlane.xlu0 %1004 }
 0x154   : > { %v1013_v29 = vrot.slane %v2511_v27, 1  ;;  %v1014_v37 = vrot.slane %v2511_v27, 2  ;;  %v1015_v38 = vrot.slane %v2511_v27, 3  ;;  %v1016_v57 = vrot.slane %v2511_v27, 4 }
 0x155   : > { %v1017_v62 = vrot.slane %v2511_v27, 5  ;;  %v1018_v52 = vrot.slane %v2511_v27, 6  ;;  %v1019_v30 = vrot.slane %v2511_v27, 7  ;;  %vm3208_vm10 = vcmp.eq.f32.partialorder %v2205_v3, %v2511_v27 }
 0x156   : > { %vm3207_vm11 = vcmp.eq.f32.partialorder %v2209_v9, %v2511_v27  ;;  %vm2533_vm12 = vcmp.eq.f32.partialorder %v2221_v39, %v1013_v29  ;;  %vm2538_vm13 = vcmp.eq.f32.partialorder %v2223_v40, %v1013_v29  ;;  %vm2543_vm14 = vcmp.eq.f32.partialorder %v2240_v12, %v1014_v37 }
 0x157   : > { %vm2548_vm15 = vcmp.eq.f32.partialorder %v2242_v13, %v1014_v37  ;;  %vm2553_vm7 = vcmp.eq.f32.partialorder %v2259_v49, %v1015_v38  ;;  %vm2558_vm9 = vcmp.eq.f32.partialorder %v2264_v56, %v1015_v38  ;;  %v3263_v40 = vmov 0 }
 0x158   : > { %v3264_v40 = vsel %vm2558_vm9, 4294967295, %v3263_v40  ;;  %vm2563_vm8 = vcmp.eq.f32.partialorder %v2281_v50, %v1016_v57  ;;  %v3265_v12 = vmov 0  ;;  %vm2568_vm6 = vcmp.eq.f32.partialorder %v2284_v55, %v1016_v57 }
 0x159   : > { %v3266_v12 = vsel %vm2563_vm8, 4294967295, %v3265_v12  ;;  %v3267_v13 = vmov 0  ;;  %vm2573_vm5 = vcmp.eq.f32.partialorder %v2296_v17, %v1017_v62  ;;  %v3269_v49 = vmov 0 }
 0x15a   : > { %v3268_v13 = vsel %vm2568_vm6, 4294967295, %v3267_v13  ;;  %v3270_v49 = vsel %vm2573_vm5, 4294967295, %v3269_v49  ;;  %vm2578_vm4 = vcmp.eq.f32.partialorder %v2298_v18, %v1017_v62  ;;  %v3271_v56 = vmov 0 }
 0x15b   : > { %v3272_v56 = vsel %vm2578_vm4, 4294967295, %v3271_v56  ;;  %vm2583_vm3 = vcmp.eq.f32.partialorder %v2323_v46, %v1018_v52  ;;  %v3273_v50 = vmov 0  ;;  %vm2588_vm2 = vcmp.eq.f32.partialorder %v2325_v47, %v1018_v52 }
 0x15c   : > { %v3274_v50 = vsel %vm2583_vm3, 4294967295, %v3273_v50  ;;  %v3275_v55 = vmov 0  ;;  %vm2593_vm1 = vcmp.eq.f32.partialorder %v2346_v26, %v1019_v30  ;;  %v3277_v17 = vmov 0 }
 0x15d   : > { %v3276_v55 = vsel %vm2588_vm2, 4294967295, %v3275_v55  ;;  %v3278_v17 = vsel %vm2593_vm1, 4294967295, %v3277_v17  ;;  %v1077_v18 = vsel %vm2533_vm12, %v2520_v43, 16  ;;  %vm2601_vm0 = vcmp.eq.f32.partialorder %v2351_v33, %v1019_v30 }
 0x15e   : > { %v3279_v46 = vmov 0  ;;  %v1075_v47 = vsel %vm3208_vm10, %v2520_v43, 16  ;;  %v1076_v26 = vsel %vm3207_vm11, %v2524_v31, 16  ;;  %v1079_v63 = vsel %vm2543_vm14, %v2520_v43, 16 }
 0x15f   : > { %v3280_v46 = vsel %vm2601_vm0, 4294967295, %v3279_v46  ;;  %v1078_v33 = vsel %vm2538_vm13, %v2524_v31, 16  ;;  %v1080_v36 = vsel %vm2548_vm15, %v2524_v31, 16  ;;  %v1081_v61 = vsel %vm2553_vm7, %v2520_v43, 16 }
 0x160   : > { %v1082_v42 = vsel %vm2558_vm9, %v2524_v31, 16  ;;  %v1083_v5 = vsel %vm2563_vm8, %v2520_v43, 16  ;;  %v1084_v10 = vsel %vm2568_vm6, %v2524_v31, 16  ;;  %v1085_v6 = vsel %vm2573_vm5, %v2520_v43, 16 }
 0x161   : > { %v1103_v58 = vrot.slane %v1077_v18, 7  ;;  %v1086_v59 = vsel %vm2578_vm4, %v2524_v31, 16  ;;  %v1087_v54 = vsel %vm2583_vm3, %v2520_v43, 16  ;;  %v1088_v20 = vsel %vm2588_vm2, %v2524_v31, 16 }
 0x162   : > { %v1105_v1 = vrot.slane %v1079_v63, 6  ;;  %v1089_v15 = vsel %vm2593_vm1, %v2520_v43, 16  ;;  %vm3281_vm11 = vcmask 1041409   ;;  %v1107_v29 = vrot.slane %v1081_v61, 5 }
 0x163   : > { %v1104_v19 = vsel %vm3281_vm11, %v1103_v58, %v1075_v47  ;;  %v1117_v37 = vrot.slane %v1078_v33, 7  ;;  %v1090_v38 = vsel %vm2601_vm0, %v2524_v31, 16  ;;  %vm3282_vm10 = vcmask 1042434   ;;  %vm3284_vm2 = vmmov %vm3281_vm11 }
 0x164   : > { %v1106_v57 = vsel %vm3282_vm10, %v1105_v1, %v1104_v19  ;;  %v1109_v62 = vrot.slane %v1083_v5, 4  ;;  %v1119_v52 = vrot.slane %v1080_v36, 6  ;;  %vm3283_vm3 = vcmask 1043459   ;;  %vm3286_vm11 = vmmov %vm3282_vm10 }
 0x165   : > { %v1108_v30 = vsel %vm3283_vm3, %v1107_v29, %v1106_v57  ;;  %v1111_v18 = vrot.slane %v1085_v6, 3  ;;  %v1118_v63 = vsel %vm3284_vm2, %v1117_v37, %v1076_v26  ;;  %v1121_v23 = vrot.slane %v1082_v42, 5  ;;  %vm3288_vm0 = vmmov %vm3283_vm3 }
 0x166   : > { %vm3285_vm4 = vcmask 1044484   ;;  %v1113_v22 = vrot.slane %v1087_v54, 2  ;;  %v1120_v47 = vsel %vm3286_vm11, %v1119_v52, %v1118_v63  ;;  %v1123_v33 = vrot.slane %v1084_v10, 4 }
 0x167   : > { %v1110_v25 = vsel %vm3285_vm4, %v1109_v62, %v1108_v30  ;;  %vm3287_vm1 = vcmask 1045509   ;;  %v1115_v58 = vrot.slane %v1089_v15, 1  ;;  %v1122_v16 = vsel %vm3288_vm0, %v1121_v23, %v1120_v47  ;;  %vm3290_vm5 = vmmov %vm3285_vm4 }
 0x168   : > { %v1112_v61 = vsel %vm3287_vm1, %v1111_v18, %v1110_v25  ;;  %v1125_v1 = vrot.slane %v1086_v59, 3  ;;  %vm3289_vm10 = vcmask 1046534   ;;  %v1124_v5 = vsel %vm3290_vm5, %v1123_v33, %v1122_v16  ;;  %vm3292_vm2 = vmmov %vm3287_vm1 }
 0x169   : > { %v1114_v36 = vsel %vm3289_vm10, %v1113_v22, %v1112_v61  ;;  %v1127_v6 = vrot.slane %v1088_v20, 2  ;;  %vm3291_vm3 = vcmask 1047559   ;;  %v1129_v19 = vrot.slane %v1090_v38, 1  ;;  %vm3293_vm4 = vmmov %vm3289_vm10 }
 0x16a   : > { %v1116_v26 = vsel %vm3291_vm3, %v1115_v58, %v1114_v36  ;;  %v1126_v42 = vsel %vm3292_vm2, %v1125_v1, %v1124_v5  ;;  %vm3294_vm11 = vmmov %vm3291_vm3  ;;  %v3297_v57 = vmov 0  ;;  %v3299_v62 = vmov 0 }
 0x16b   : > { %v1128_v54 = vsel %vm3293_vm4, %v1127_v6, %v1126_v42  ;;  %v3301_v52 = vmov 0 }
 0x16c   : > { %v1130_v10 = vsel %vm3294_vm11, %v1129_v19, %v1128_v54 }
 0x16d   : > { %vm1151_vm6 = vcmp.lt.s32.totalorder %v1116_v26, %v1130_v10 }
 0x16e   : > { %v2666_v25 = vsel %vm1151_vm6, %v1116_v26, %v1130_v10 }
 0x16f   : > { %v1154_v23 = vshra.s32 %v2666_v25, 16 }
 0x171   : > { %v2669_v59 = vcvt.s32.f32 %v1154_v23 }
 0x173   : > { %1157 = vmin.xlane.f32.xlu1 %v2669_v59 }
 0x17e   : > { %v2672_v16 = vpop.xlane.xlu0 %1009 }
 0x17f   : > { %v1020_v22 = vrot.slane %v2672_v16, 1  ;;  %v1021_v20 = vrot.slane %v2672_v16, 2  ;;  %v1022_v15 = vrot.slane %v2672_v16, 3  ;;  %v1023_v29 = vrot.slane %v2672_v16, 4 }
 0x180   : > { %v1024_v37 = vrot.slane %v2672_v16, 5  ;;  %vm3315_vm4 = vcmp.eq.f32.partialorder %v2437_v24, %v2672_v16 }
 0x181   : > { %vm2680_vm0 = vcmp.eq.f32.partialorder %v2439_v0, %v1020_v22  ;;  %vm2685_vm1 = vcmp.eq.f32.partialorder %v2444_v53, %v1020_v22  ;;  %vm2690_vm5 = vcmp.eq.f32.partialorder %v2446_v60, %v1021_v20  ;;  %vm2697_vm10 = vcmp.eq.f32.partialorder %v2448_v32, %v1021_v20 }
 0x182   : > { %v3298_v57 = vsel %vm2685_vm1, 4294967295, %v3297_v57  ;;  %v3300_v62 = vsel %vm2690_vm5, 4294967295, %v3299_v62  ;;  %v3302_v52 = vsel %vm2697_vm10, 4294967295, %v3301_v52  ;;  %vm2702_vm3 = vcmp.eq.f32.partialorder %v2458_v21, %v1022_v15 }
 0x183   : > { %v3303_v0 = vmov 0  ;;  %vm2707_vm2 = vcmp.eq.f32.partialorder %v2461_v14, %v1022_v15  ;;  %v3305_v53 = vmov 0  ;;  %vm2714_vm11 = vcmp.eq.f32.partialorder %v2469_v28, %v1023_v29 }
 0x184   : > { %v3304_v0 = vsel %vm2702_vm3, 4294967295, %v3303_v0  ;;  %v3306_v53 = vsel %vm2707_vm2, 4294967295, %v3305_v53  ;;  %v3307_v60 = vmov 0  ;;  %vm2719_vm6 = vcmp.eq.f32.partialorder %v2473_v34, %v1023_v29 }
 0x185   : > { %v3308_v60 = vsel %vm2714_vm11, 4294967295, %v3307_v60  ;;  %v3309_v32 = vmov 0  ;;  %vm2724_vm8 = vcmp.eq.f32.partialorder %v2475_v41, %v1024_v37  ;;  %v3311_v21 = vmov 0 }
 0x186   : > { %v3310_v32 = vsel %vm2719_vm6, 4294967295, %v3309_v32  ;;  %v3312_v21 = vsel %vm2724_vm8, 4294967295, %v3311_v21  ;;  %vm2729_vm9 = vcmp.eq.f32.partialorder %v2477_v51, %v1024_v37  ;;  %v3313_v14 = vmov 0 }
 0x187   : > { %v3314_v14 = vsel %vm2729_vm9, 4294967295, %v3313_v14  ;;  %v1093_v28 = vsel %vm2680_vm0, %v2520_v43, 16  ;;  %v1094_v34 = vsel %vm2685_vm1, %v2524_v31, 16  ;;  %v1095_v41 = vsel %vm2690_vm5, %v2520_v43, 16 }
 0x188   : > { %v1091_v51 = vsel %vm3315_vm4, %v2520_v43, 16  ;;  %v1096_v30 = vsel %vm2697_vm10, %v2524_v31, 16  ;;  %v1097_v18 = vsel %vm2702_vm3, %v2520_v43, 16  ;;  %v1098_v63 = vsel %vm2707_vm2, %v2524_v31, 16 }
 0x189   : > { %vm3316_vm5 = vcmp.eq.f32.partialorder %v2442_v11, %v2672_v16  ;;  %v1099_v33 = vsel %vm2714_vm11, %v2520_v43, 16  ;;  %v1131_v61 = vrot.slane %v1093_v28, 7  ;;  %v1133_v58 = vrot.slane %v1095_v41, 6 }
 0x18a   : > { %v1092_v47 = vsel %vm3316_vm5, %v2524_v31, 16  ;;  %v1100_v1 = vsel %vm2719_vm6, %v2524_v31, 16  ;;  %v1101_v36 = vsel %vm2724_vm8, %v2520_v43, 16  ;;  %v1135_v5 = vrot.slane %v1097_v18, 5 }
 0x18b   : > { %v1141_v6 = vrot.slane %v1094_v34, 7  ;;  %v1102_v26 = vsel %vm2729_vm9, %v2524_v31, 16  ;;  %vm3317_vm5 = vcmask 1041409   ;;  %v1143_v19 = vrot.slane %v1096_v30, 6 }
 0x18c   : > { %v1132_v42 = vsel %vm3317_vm5, %v1131_v61, %v1091_v51  ;;  %v1145_v54 = vrot.slane %v1098_v63, 5  ;;  %vm3318_vm4 = vcmask 1042434   ;;  %v1137_v23 = vrot.slane %v1099_v33, 4  ;;  %vm3319_vm11 = vmmov %vm3317_vm5 }
 0x18d   : > { %v1134_v10 = vsel %vm3318_vm4, %v1133_v58, %v1132_v42  ;;  %v1142_v22 = vsel %vm3319_vm11, %v1141_v6, %v1092_v47  ;;  %vm3320_vm6 = vcmask 1043459   ;;  %v1139_v15 = vrot.slane %v1101_v36, 3  ;;  %vm3321_vm2 = vmmov %vm3318_vm4 }
 0x18e   : > { %v1136_v20 = vsel %vm3320_vm6, %v1135_v5, %v1134_v10  ;;  %v1144_v29 = vsel %vm3321_vm2, %v1143_v19, %v1142_v22  ;;  %v1147_v37 = vrot.slane %v1100_v1, 4  ;;  %vm3322_vm8 = vcmask 1044484   ;;  %vm3323_vm3 = vmmov %vm3320_vm6  ;;  %v1002_v22 = vld [vmem:[#allocation2 + $0x1] ss:$2 sm:$0x3] }
 0x18f   : > { %v1138_v28 = vsel %vm3322_vm8, %v1137_v23, %v1136_v20  ;;  %v1146_v34 = vsel %vm3323_vm3, %v1145_v54, %v1144_v29  ;;  %v1149_v41 = vrot.slane %v1102_v26, 3  ;;  %vm3324_vm9 = vcmask 1045509   ;;  %vm3325_vm5 = vmmov %vm3322_vm8 }
 0x190   : > { %v1140_v51 = vsel %vm3324_vm9, %v1139_v15, %v1138_v28  ;;  %v1148_v30 = vsel %vm3325_vm5, %v1147_v37, %v1146_v34  ;;  %vm3326_vm10 = vmmov %vm3324_vm9  ;;  %vm3327_vm4 = vcmask 1045504   ;;  %v1153_v1 = vand.u32 65535, %v2666_v25 }
 0x191   : > { %v1150_v18 = vsel %vm3326_vm10, %v1149_v41, %v1148_v30  ;;  %v1167_v63 = vsel %vm3327_vm4, %v1140_v51, 2147483647  ;;  %vm3328_vm11 = vmmov %vm3327_vm4  ;;  %v3329_v29 = vsub.s32 0, %v2409_v48  ;;  %v3330_v37 = vsub.s32 1, %v2409_v48 }
 0x192   : > { %v1168_v47 = vsel %vm3328_vm11, %v1150_v18, 2147483647  ;;  %v1155_v5 = vcvt.s32.f32 %v1153_v1  ;;  %v1904_v34 = vmov 0   ;;  %vm3331_vm2 = vcmp.eq.f32.partialorder %v2205_v3, %v2511_v27 }
 0x193   : > { %vm1169_vm6 = vcmp.lt.s32.totalorder %v1167_v63, %v1168_v47  ;;  %v2796_v28 = vrot.slane %v1002_v22, %v3330_v37  ;;  %vm3334_vm4 = vcmp.eq.f32.partialorder %v2209_v9, %v2511_v27  ;;  %vm3366_vm1 = vnez %v3270_v49 }
 0x194   : > { %v1170_v33 = vsel %vm1169_vm6, %v1167_v63, %v1168_v47 }
 0x195   : > { %v1172_v61 = vshra.s32 %v1170_v33, 16  ;;  %v1171_v26 = vand.u32 65535, %v1170_v33 }
 0x197   : > { %v1174_v58 = vcvt.s32.f32 %v1172_v61  ;;  %v1173_v19 = vcvt.s32.f32 %v1171_v26 }
 0x199   : > { %1175 = vmin.xlane.f32.xlu1 %v1174_v58 }
 0x200   : > { %v1158_v36 = vpop.xlane.xlu1 %1157 }
 0x201   : > { %vm1159_vm8 = vcmp.eq.f32.partialorder %v2669_v59, %v1158_v36  ;;  %v1164_v10 = vcvt.f32.s32 %v1158_v36  ;;  %v2792_v59 = vrot.slane %v1002_v22, %v3329_v29 }
 0x202   : > { %v1160_v6 = vsel %vm1159_vm8, %v1155_v5, inf }
 0x203   : > { %1161 = vmin.xlane.f32.xlu0 %v1160_v6  ;;  %v1165_v20 = vshll.u32 %v1164_v10, 16 }
 0x226   : > { %v2785_v42 = vpop.xlane.xlu1 %1175 }
 0x227   : > { %vm1177_vm9 = vcmp.eq.f32.partialorder %v1174_v58, %v2785_v42 }
 0x228   : > { %v1178_v54 = vsel %vm1177_vm9, %v1173_v19, inf }
 0x229   : > { %1179 = vmin.xlane.f32.xlu1 %v1178_v54 }
 0x290   : > { %v1162_v23 = vpop.xlane.xlu0 %1161 }
 0x291   : > { %v1163_v15 = vcvt.f32.s32 %v1162_v23 }
 0x293   : > { %v2788_v25 = vadd.s32 %v1165_v20, %v1163_v15 }
 0x295   : > { %vm1185_vm10 = vcmp.eq.s32.totalorder %v2520_v43, %v2788_v25  ;;  %vm1186_vm3 = vcmp.eq.s32.totalorder %v2524_v31, %v2788_v25 }
 0x296   : > { %v1189_v41 = vsel %vm1185_vm10, 1, %v1904_v34  ;;  %v1190_v51 = vsel %vm1186_vm3, 1, %v1904_v34  ;;  %vm2807_vm5 = vmand %vm3331_vm2, %vm1185_vm10 }
 0x297   : > { %v1193_v18 = vrot.slane %v1189_v41, 1  ;;  %v1194_v63 = vrot.slane %v1190_v51, 1  ;;  %v1195_v47 = vrot.slane %v1189_v41, 2  ;;  %v1196_v33 = vrot.slane %v1190_v51, 2  ;;  %vm2814_vm11 = vmand %vm3334_vm4, %vm1186_vm3 }
 0x298   : > { %v1197_v58 = vrot.slane %v1189_v41, 3  ;;  %v1198_v1 = vrot.slane %v1190_v51, 3  ;;  %v1281_v3 = vsel %vm2807_vm5, %v2792_v59, 16  ;;  %v1282_v36 = vsel %vm2814_vm11, %v2796_v28, 16 }
 0x299   : > { %vm1219_vm6 = vcmp.ne.s32.totalorder %v1193_v18, 0  ;;  %vm1220_vm8 = vcmp.ne.s32.totalorder %v1194_v63, 0  ;;  %vm2824_vm9 = vcmp.ne.s32.totalorder %v1195_v47, 0  ;;  %vm2828_vm10 = vcmp.ne.s32.totalorder %v1196_v33, 0 }
 0x29a   : > { %vm2832_vm3 = vcmp.ne.s32.totalorder %v1197_v58, 0  ;;  %vm1247_vm2 = vmand %vm2533_vm12, %vm1219_vm6  ;;  %v1199_v26 = vrot.slane %v1189_v41, 4  ;;  %v1200_v19 = vrot.slane %v1190_v51, 4  ;;  %vm2838_vm5 = vcmp.ne.s32.totalorder %v1198_v1, 0 }
 0x29b   : > { %vm1248_vm4 = vmand %vm2538_vm13, %vm1220_vm8  ;;  %v1283_v10 = vsel %vm1247_vm2, %v2792_v59, 16  ;;  %v1201_v23 = vrot.slane %v1189_v41, 5  ;;  %v1202_v22 = vrot.slane %v1190_v51, 5  ;;  %v1203_v15 = vrot.slane %v1189_v41, 6 }
 0x29c   : > { %vm1249_vm11 = vmand %vm2543_vm14, %vm2824_vm9  ;;  %v1284_v2 = vsel %vm1248_vm4, %v2796_v28, 16  ;;  %v1309_v20 = vrot.slane %v1283_v10, 7  ;;  %v1204_v29 = vrot.slane %v1190_v51, 6  ;;  %v1205_v30 = vrot.slane %v1189_v41, 7 }
 0x29d   : > { %vm1250_vm12 = vmand %vm2548_vm15, %vm2828_vm10  ;;  %v1285_v7 = vsel %vm1249_vm11, %v2792_v59, 16  ;;  %v1323_v37 = vrot.slane %v1284_v2, 7  ;;  %vm2855_vm13 = vcmp.ne.s32.totalorder %v1199_v26, 0  ;;  %vm3347_vm14 = vcmask 1041409  }
 0x29e   : > { %v1286_v4 = vsel %vm1250_vm12, %v2796_v28, 16  ;;  %v1310_v63 = vsel %vm3347_vm14, %v1309_v20, %v1281_v3  ;;  %v1311_v47 = vrot.slane %v1285_v7, 6  ;;  %vm2861_vm6 = vcmp.ne.s32.totalorder %v1200_v19, 0  ;;  %vm1251_vm15 = vmand %vm2553_vm7, %vm2832_vm3 }
 0x29f   : > { %vm3350_vm8 = vmmov %vm3347_vm14  ;;  %v1325_v41 = vrot.slane %v1286_v4, 6  ;;  %v1206_v61 = vrot.slane %v1190_v51, 7  ;;  %vm2870_vm9 = vcmp.ne.s32.totalorder %v1201_v23, 0  ;;  %vm3353_vm10 = vnez %v3264_v40 }
 0x2a0   : > { %v1324_v35 = vsel %vm3350_vm8, %v1323_v37, %v1282_v36  ;;  %vm1252_vm2 = vmand %vm3353_vm10, %vm2838_vm5  ;;  %vm3354_vm4 = vcmask 1042434   ;;  %vm2879_vm11 = vcmp.ne.s32.totalorder %v1202_v22, 0  ;;  %vm2883_vm7 = vcmp.ne.s32.totalorder %v1203_v15, 0 }
 0x2a1   : > { %v1312_v1 = vsel %vm3354_vm4, %v1311_v47, %v1310_v63  ;;  %vm2887_vm3 = vcmp.ne.s32.totalorder %v1204_v29, 0  ;;  %vm3361_vm12 = vnez %v3266_v12  ;;  %vm3362_vm5 = vmmov %vm3354_vm4  ;;  %vm2896_vm8 = vcmp.ne.s32.totalorder %v1205_v30, 0 }
 0x2a2   : > { %vm1253_vm14 = vmand %vm3361_vm12, %vm2855_vm13  ;;  %v1326_v40 = vsel %vm3362_vm5, %v1325_v41, %v1324_v35  ;;  %vm3365_vm10 = vnez %v3268_v13  ;;  %v1287_v5 = vsel %vm1251_vm15, %v2792_v59, 16  ;;  %v1288_v9 = vsel %vm1252_vm2, %v2796_v28, 16 }
 0x2a3   : > { %vm1254_vm4 = vmand %vm3365_vm10, %vm2861_vm6  ;;  %v1289_v12 = vsel %vm1253_vm14, %v2792_v59, 16  ;;  %v1313_v26 = vrot.slane %v1287_v5, 5  ;;  %v1327_v19 = vrot.slane %v1288_v9, 5  ;;  %vm2912_vm12 = vcmp.ne.s32.totalorder %v1206_v61, 0 }
 0x2a4   : > { %vm1255_vm13 = vmand %vm3366_vm1, %vm2870_vm9  ;;  %v1290_v6 = vsel %vm1254_vm4, %v2796_v28, 16  ;;  %vm3369_vm6 = vnez %v3272_v56  ;;  %v1315_v10 = vrot.slane %v1289_v12, 4  ;;  %vm3370_vm1 = vnez %v3274_v50 }
 0x2a5   : > { %vm1256_vm15 = vmand %vm3369_vm6, %vm2879_vm11  ;;  %v1291_v13 = vsel %vm1255_vm13, %v2792_v59, 16  ;;  %v1329_v49 = vrot.slane %v1290_v6, 4  ;;  %vm3371_vm2 = vcmask 1043459   ;;  %vm3373_vm11 = vnez %v3276_v55 }
 0x2a6   : > { %vm1257_vm9 = vmand %vm3370_vm1, %vm2883_vm7  ;;  %v1292_v23 = vsel %vm1256_vm15, %v2796_v28, 16  ;;  %v1314_v22 = vsel %vm3371_vm2, %v1313_v26, %v1312_v1  ;;  %v1317_v2 = vrot.slane %v1291_v13, 3  ;;  %vm3374_vm10 = vcmask 1044484  }
 0x2a7   : > { %vm3372_vm14 = vmmov %vm3371_vm2  ;;  %v1293_v56 = vsel %vm1257_vm9, %v2792_v59, 16  ;;  %v1316_v15 = vsel %vm3374_vm10, %v1315_v10, %v1314_v22  ;;  %v1331_v50 = vrot.slane %v1292_v23, 3  ;;  %vm3376_vm7 = vnez %v3278_v17 }
 0x2a8   : > { %v1328_v20 = vsel %vm3372_vm14, %v1327_v19, %v1326_v40  ;;  %vm1258_vm5 = vmand %vm3373_vm11, %vm2887_vm3  ;;  %vm3377_vm6 = vcmask 1045509   ;;  %v1319_v30 = vrot.slane %v1293_v56, 2  ;;  %vm3378_vm3 = vnez %v3280_v46 }
 0x2a9   : > { %vm3375_vm4 = vmmov %vm3374_vm10  ;;  %v1294_v7 = vsel %vm1258_vm5, %v2796_v28, 16  ;;  %v1318_v37 = vsel %vm3377_vm6, %v1317_v2, %v1316_v15  ;;  %vm3380_vm9 = vcmask 1046534   ;;  %vm3382_vm2 = vcmask 1047559  }
 0x2aa   : > { %v1330_v29 = vsel %vm3375_vm4, %v1329_v49, %v1328_v20  ;;  %vm1259_vm13 = vmand %vm3376_vm7, %vm2896_vm8  ;;  %v1333_v4 = vrot.slane %v1294_v7, 2  ;;  %v1320_v17 = vsel %vm3380_vm9, %v1319_v30, %v1318_v37  ;;  %v1182_v3 = vcvt.f32.s32 %v2785_v42 }
 0x2ab   : > { %vm1260_vm15 = vmand %vm3378_vm3, %vm2912_vm12  ;;  %v1295_v55 = vsel %vm1259_vm13, %v2792_v59, 16  ;;  %vm3384_vm10 = vcmp.eq.f32.partialorder %v2437_v24, %v2672_v16  ;;  %vm3389_vm3 = vcmp.eq.f32.partialorder %v2442_v11, %v2672_v16  ;;  %v947_v49 = vrot.slane %v2505_v45, 4 }
 0x2ac   : > { %vm3379_vm1 = vmmov %vm3377_vm6  ;;  %v1296_v63 = vsel %vm1260_vm15, %v2796_v28, 16  ;;  %v1321_v47 = vrot.slane %v1295_v55, 1  ;;  %v1183_v51 = vshll.u32 %v1182_v3, 16 }
 0x2ad   : > { %v1332_v18 = vsel %vm3379_vm1, %v1331_v50, %v1330_v29  ;;  %vm3381_vm8 = vmmov %vm3380_vm9  ;;  %v1335_v35 = vrot.slane %v1296_v63, 1 }
 0x2ae   : > { %v1334_v33 = vsel %vm3381_vm8, %v1333_v4, %v1332_v18  ;;  %v1322_v41 = vsel %vm3382_vm2, %v1321_v47, %v1320_v17  ;;  %vm3383_vm14 = vmmov %vm3382_vm2 }
 0x2af   : > { %v1336_v61 = vsel %vm3383_vm14, %v1335_v35, %v1334_v33  ;;  %vm3398_vm14 = vnez %v3298_v57 }
 0x2b0   : > { %vm1357_vm11 = vcmp.lt.s32.totalorder %v1322_v41, %v1336_v61 }
 0x2b1   : > { %v2952_v46 = vsel %vm1357_vm11, %v1322_v41, %v1336_v61 }
 0x2b2   : > { %v1360_v58 = vshra.s32 %v2952_v46, 16 }
 0x2b4   : > { %v2955_v1 = vcvt.s32.f32 %v1360_v58 }
 0x2b6   : > { %1363 = vmin.xlane.f32.xlu0 %v2955_v1  ;;  %v1180_v39 = vpop.xlane.xlu1 %1179 }
 0x2b7   : > { %v1181_v40 = vcvt.f32.s32 %v1180_v39 }
 0x2b9   : > { %v2959_v36 = vadd.s32 %v1183_v51, %v1181_v40 }
 0x2bb   : > { %vm1187_vm12 = vcmp.eq.s32.totalorder %v2520_v43, %v2959_v36  ;;  %vm1188_vm5 = vcmp.eq.s32.totalorder %v2524_v31, %v2959_v36  ;;  %v919_v43 = vrot.slane %v2501_v8, 4 }
 0x2bc   : > { %v1191_v5 = vsel %vm1187_vm12, 1, %v1904_v34  ;;  %v1192_v9 = vsel %vm1188_vm5, 1, %v1904_v34  ;;  %vm2973_vm4 = vmand %vm3384_vm10, %vm1187_vm12  ;;  %v3427_v34 = vld [vmem:[#allocation16_spill] sm:$0xff] }
 0x2bd   : > { %v1207_v12 = vrot.slane %v1191_v5, 1  ;;  %v1208_v42 = vrot.slane %v1192_v9, 1  ;;  %v1209_v6 = vrot.slane %v1191_v5, 2  ;;  %v1210_v26 = vrot.slane %v1192_v9, 2  ;;  %vm2987_vm15 = vmand %vm3389_vm3, %vm1188_vm5 }
 0x2be   : > { %v1211_v19 = vrot.slane %v1191_v5, 3  ;;  %v1212_v54 = vrot.slane %v1192_v9, 3  ;;  %v1213_v13 = vrot.slane %v1191_v5, 4  ;;  %v1214_v10 = vrot.slane %v1192_v9, 4 }
 0x2bf   : > { %vm1235_vm7 = vcmp.ne.s32.totalorder %v1207_v12, 0  ;;  %vm1236_vm13 = vcmp.ne.s32.totalorder %v1208_v42, 0  ;;  %vm2977_vm6 = vcmp.ne.s32.totalorder %v1209_v6, 0  ;;  %vm2991_vm1 = vcmp.ne.s32.totalorder %v1210_v26, 0 }
 0x2c0   : > { %vm1263_vm9 = vmand %vm2680_vm0, %vm1235_vm7  ;;  %vm2997_vm8 = vcmp.ne.s32.totalorder %v1211_v19, 0  ;;  %vm3001_vm2 = vcmp.ne.s32.totalorder %v1212_v54, 0  ;;  %v1215_v22 = vrot.slane %v1191_v5, 5  ;;  %vm3008_vm12 = vcmp.ne.s32.totalorder %v1213_v13, 0 }
 0x2c1   : > { %vm1264_vm11 = vmand %vm3398_vm14, %vm1236_vm13  ;;  %v1299_v11 = vsel %vm1263_vm9, %v2792_v59, 16  ;;  %vm3401_vm0 = vnez %v3300_v62  ;;  %v1216_v56 = vrot.slane %v1192_v9, 5  ;;  %vm3017_vm10 = vcmp.ne.s32.totalorder %v1214_v10, 0 }
 0x2c2   : > { %vm1265_vm5 = vmand %vm3401_vm0, %vm2977_vm6  ;;  %v1300_v38 = vsel %vm1264_vm11, %v2796_v28, 16  ;;  %v1337_v20 = vrot.slane %v1299_v11, 7  ;;  %vm3404_vm7 = vnez %v3302_v52  ;;  %v1297_v57 = vsel %vm2973_vm4, %v2792_v59, 16 }
 0x2c3   : > { %vm1266_vm13 = vmand %vm3404_vm7, %vm2991_vm1  ;;  %v1301_v62 = vsel %vm1265_vm5, %v2792_v59, 16  ;;  %v1347_v29 = vrot.slane %v1300_v38, 7  ;;  %vm3405_vm6 = vnez %v3304_v0  ;;  %v1298_v50 = vsel %vm2987_vm15, %v2796_v28, 16 }
 0x2c4   : > { %vm1267_vm3 = vmand %vm3405_vm6, %vm2997_vm8  ;;  %v1302_v7 = vsel %vm1266_vm13, %v2796_v28, 16  ;;  %vm3406_vm9 = vcmask 1041409   ;;  %v1339_v37 = vrot.slane %v1301_v62, 6  ;;  %vm3407_vm4 = vnez %v3306_v53 }
 0x2c5   : > { %v1338_v52 = vsel %vm3406_vm9, %v1337_v20, %v1297_v57  ;;  %vm1268_vm1 = vmand %vm3407_vm4, %vm3001_vm2  ;;  %v1349_v55 = vrot.slane %v1302_v7, 6  ;;  %vm3043_vm11 = vcmp.ne.s32.totalorder %v1215_v22, 0  ;;  %v1303_v18 = vsel %vm1267_vm3, %v2792_v59, 16 }
 0x2c6   : > { %vm3408_vm14 = vmmov %vm3406_vm9  ;;  %vm3048_vm15 = vcmp.ne.s32.totalorder %v1216_v56, 0  ;;  %vm3413_vm8 = vnez %v3308_v60  ;;  %v1304_v53 = vsel %vm1268_vm1, %v2796_v28, 16  ;;  %vm3414_vm2 = vcmask 1042434  }
 0x2c7   : > { %v1348_v30 = vsel %vm3408_vm14, %v1347_v29, %v1298_v50  ;;  %vm1269_vm0 = vmand %vm3413_vm8, %vm3008_vm12  ;;  %v1340_v63 = vsel %vm3414_vm2, %v1339_v37, %v1338_v52  ;;  %v1341_v17 = vrot.slane %v1303_v18, 5  ;;  %vm3415_vm5 = vnez %v3310_v32 }
 0x2c8   : > { %vm1270_vm7 = vmand %vm3415_vm5, %vm3017_vm10  ;;  %v1305_v47 = vsel %vm1269_vm0, %v2792_v59, 16  ;;  %v1351_v35 = vrot.slane %v1304_v53, 5  ;;  %vm3417_vm6 = vnez %v3312_v21  ;;  %vm3418_vm3 = vcmask 1043459  }
 0x2c9   : > { %vm3416_vm13 = vmmov %vm3414_vm2  ;;  %v1306_v60 = vsel %vm1270_vm7, %v2796_v28, 16  ;;  %v1342_v41 = vsel %vm3418_vm3, %v1341_v17, %v1340_v63  ;;  %v1343_v61 = vrot.slane %v1305_v47, 4  ;;  %vm3419_vm9 = vnez %v3314_v14 }
 0x2ca   : > { %v1350_v33 = vsel %vm3416_vm13, %v1349_v55, %v1348_v30  ;;  %vm1271_vm12 = vmand %vm3417_vm6, %vm3043_vm11  ;;  %v1353_v3 = vrot.slane %v1306_v60, 4  ;;  %vm3421_vm1 = vcmask 1044484   ;;  %vm3423_vm11 = vcmask 1045509  }
 0x2cb   : > { %vm1272_vm10 = vmand %vm3419_vm9, %vm3048_vm15  ;;  %v1307_v32 = vsel %vm1271_vm12, %v2792_v59, 16  ;;  %v1344_v21 = vsel %vm3421_vm1, %v1343_v61, %v1342_v41  ;;  %vm3425_vm0 = vcmask 1045504   ;;  %v927_v10 = vrot.slane %v2503_v44, 4  ;;  %v953_v61 = vld [vmem:[%s2135_s8] ss:$2 sm:$0x3] }
 0x2cc   : > { %vm3420_vm4 = vmmov %vm3418_vm3  ;;  %v1308_v39 = vsel %vm1272_vm10, %v2796_v28, 16  ;;  %v1345_v51 = vrot.slane %v1307_v32, 3  ;;  %v1359_v28 = vand.u32 65535, %v2952_v46  ;;  %v939_v24 = vrot.slane %v3427_v34, 4 }
 0x2cd   : > { %v1352_v58 = vsel %vm3420_vm4, %v1351_v35, %v1350_v33  ;;  %vm3422_vm14 = vmmov %vm3421_vm1  ;;  %v1355_v5 = vrot.slane %v1308_v39, 3  ;;  %v920_v31 = vmax.f32 %v2501_v8, %v919_v43  ;;  %v928_v46 = vmax.f32 %v2503_v44, %v927_v10 }
 0x2ce   : > { %v1354_v40 = vsel %vm3422_vm14, %v1353_v3, %v1352_v58  ;;  %v1346_v9 = vsel %vm3423_vm11, %v1345_v51, %v1344_v21  ;;  %vm3424_vm8 = vmmov %vm3423_vm11  ;;  %v1361_v54 = vcvt.s32.f32 %v1359_v28  ;;  %v948_v11 = vmax.f32 %v2505_v45, %v947_v49  ;;  %v1582_v3 = vld [vmem:[%s2135_s8 + $0x1] ss:$2 sm:$0x3] }
 0x2cf   : > { %v1356_v12 = vsel %vm3424_vm8, %v1355_v5, %v1354_v40  ;;  %v1373_v14 = vsel %vm3425_vm0, %v1346_v9, 2147483647  ;;  %vm3426_vm15 = vmmov %vm3425_vm0  ;;  %v940_v22 = vmax.f32 %v3427_v34, %v939_v24  ;;  %v921_v20 = vrot.slane %v920_v31, 2 }
 0x2d0   : > { %v1374_v42 = vsel %vm3426_vm15, %v1356_v12, 2147483647  ;;  %v929_v56 = vrot.slane %v928_v46, 2  ;;  %v949_v15 = vrot.slane %v948_v11, 2  ;;  %v1905_v18 = vmov 1966171168  }
 0x2d1   : > { %vm1375_vm2 = vcmp.lt.s32.totalorder %v1373_v14, %v1374_v42  ;;  %v941_v57 = vrot.slane %v940_v22, 2  ;;  %v922_v62 = vmax.f32 %v920_v31, %v921_v20  ;;  %v958_v4 = vunpack.c.l.s4 %v1905_v18 }
 0x2d2   : > { %v1376_v59 = vsel %vm1375_vm2, %v1373_v14, %v1374_v42  ;;  %v930_v29 = vmax.f32 %v928_v46, %v929_v56  ;;  %v950_v8 = vmax.f32 %v948_v11, %v949_v15  ;;  %v3428_v32 = vlaneseq }
 0x2d3   : > { %v1378_v6 = vshra.s32 %v1376_v59, 16  ;;  %v1377_v23 = vand.u32 65535, %v1376_v59  ;;  %v942_v50 = vmax.f32 %v940_v22, %v941_v57  ;;  %v923_v44 = vrot.slane %v922_v62, 1 }
 0x2d4   : > { %v931_v7 = vrot.slane %v930_v29, 1  ;;  %v951_v45 = vrot.slane %v950_v8, 1  ;;  %v959_v53 = vunpack.c.0.s8 %v958_v4  ;;  %vm975_vm13 = vcmp.lt.s32.totalorder %v3428_v32, 256 }
 0x2d5   : > { %v1380_v26 = vcvt.s32.f32 %v1378_v6  ;;  %v1379_v2 = vcvt.s32.f32 %v1377_v23  ;;  %v943_v52 = vrot.slane %v942_v50, 1  ;;  %v924_v37 = vmax.f32 %v922_v62, %v923_v44 }
 0x2d6   : > { %v932_v30 = vmax.f32 %v930_v29, %v931_v7  ;;  %v952_v55 = vmax.f32 %v950_v8, %v951_v45  ;;  %v962_v17 = vsub.s32 %v959_v53, %v2409_v48 }
 0x2d7   : > { %1381 = vmin.xlane.f32.xlu1 %v1380_v26  ;;  %v944_v0 = vmax.f32 %v942_v50, %v943_v52 }
 0x2d8   : > { %v956_v63 = vcombine.low %v924_v37, %v932_v30 }
 0x2d9   : > { %v982_v47 = vcombine.low %v944_v0, %v952_v55 }
 0x2da   : > { %v963_v33 = vrot.slane %v956_v63, %v962_v17 }
 0x2db   : > { %v989_v35 = vrot.slane %v982_v47, %v962_v17 }
 0x2dc   : > { %v970_v60 = vrot.slane %v963_v33, %v962_v17 }
 0x2dd   : > { %v996_v41 = vrot.slane %v989_v35, %v962_v17 }
 0x2de   : > { %v972_v58 = vmax.f32 %v953_v61, %v970_v60 }
 0x2df   : > { %v998_v39 = vmax.f32 %v1582_v3, %v996_v41 }
 0x2e0   : > { %977 = vst.msk [vmem:[%s2135_s8] ss:$2 sm:$0x3] %vm975_vm13, %v972_v58 }
 0x2e1   : > { %1583 = vst.msk [vmem:[%s2135_s8 + $0x1] ss:$2 sm:$0x3] %vm975_vm13, %v998_v39 }
 0x343   : > { %v3084_v19 = vpop.xlane.xlu0 %1363 }
 0x344   : > { %vm1365_vm5 = vcmp.eq.f32.partialorder %v2955_v1, %v3084_v19 }
 0x345   : > { %v1366_v13 = vsel %vm1365_vm5, %v1361_v54, inf }
 0x346   : > { %1367 = vmin.xlane.f32.xlu0 %v1366_v13 }
 0x364   : > { %v3096_v1 = vpop.xlane.xlu1 %1381 }
 0x365   : > { %vm1383_vm7 = vcmp.eq.f32.partialorder %v1380_v26, %v3096_v1 }
 0x366   : > { %v1384_v38 = vsel %vm1383_vm7, %v1379_v2, inf }
 0x367   : > { %1385 = vmin.xlane.f32.xlu1 %v1384_v38 }
 0x368   : > { %1784 = shalt.err (!%p1781_p13)
}
 0x369   : > { %s1785_s20 = scalar_lea.hbm %s3108_s25, 64  ;;  %s1789_s11 = scalar_lea.hbm %s3186_s2, 128 }
 0x36a   : > { %p1786_p7 = scmp.ne.s32.totalorder %s3108_s25, %s1785_s20  ;;  %p1790_p5 = scmp.lt.u32.totalorder %s3108_s25, %s3186_s2 }
 0x36b   : > { %p1791_p4 = scmp.lt.u32.totalorder %s1789_s11, %s1785_s20  ;;  %p1793_p12 = scmp.lt.u32.totalorder %s1785_s20, %s3108_s25 }
 0x36c   : > { %p1787_p9 = pnand %p1786_p7, %p3429_p3 }
 0x36d   : > { %p1792_p2 = por %p1791_p4, %p1790_p5 }
 0x36e   : > { %p1788_p1 = pneg %p1787_p9 }
 0x36f   : > { %p1794_p6 = por %p1793_p12, %p1792_p2 }
 0x371   : > { %p1795_p10 = pnand %p1794_p6, %p1788_p1 }
 0x373   : > { %1798 = shalt.err (!%p1795_p10)
}
 0x374   : > { %1601 = dma.vmem_to_hbm [thread:$0]  (%p3429_p3), %s3110_s12, 64, %s3108_s25, %s1406_s26   ;;  %v1370_v48 = vcvt.f32.s32 %v3084_v19  ;;  %vm1395_vm6 = vcmask 7168   ;;  %v1391_v9 = vcvt.s32.f32 %v2788_v25  ;;  %vm1398_vm12 = vcmask 15360  }
 0x375   : > { %vm1401_vm3 = vcmask 23552   ;;  %v1388_v59 = vcvt.f32.s32 %v3096_v1  ;;  %v1392_v54 = vcvt.s32.f32 %v2959_v36  ;;  %vm1403_vm9 = vcmask 21504  }
 0x376   : > { %v1371_v51 = vshll.u32 %v1370_v48, 16 }
 0x377   : > { %v1389_v26 = vshll.u32 %v1388_v59, 16 }
 0x3d3   : > { %v1368_v21 = vpop.xlane.xlu0 %1367 }
 0x3d4   : > { %v1369_v40 = vcvt.f32.s32 %v1368_v21 }
 0x3d6   : > { %v1372_v5 = vadd.s32 %v1371_v51, %v1369_v40 }
 0x3d8   : > { %v1393_v12 = vcvt.s32.f32 %v1372_v5 }
 0x3da   : > { %v1396_v14 = vsel %vm1395_vm6, %v1391_v9, %v1393_v12 }
 0x3db   : > { %v1399_v42 = vsel %vm1398_vm12, %v1396_v14, %v2511_v27 }
 0x3dc   : > { %1402 = vst.msk [vmem:[%s2133_s6] sm:$0xff] %vm1401_vm3, %v1399_v42 }
 0x3f4   : > { %v1386_v6 = vpop.xlane.xlu1 %1385 }
 0x3f5   : > { %v1387_v28 = vcvt.f32.s32 %v1386_v6 }
 0x3f7   : > { %v1390_v19 = vadd.s32 %v1389_v26, %v1387_v28 }
 0x3f9   : > { %v1394_v13 = vcvt.s32.f32 %v1390_v19 }
 0x3fb   : > { %v1397_v25 = vsel %vm1395_vm6, %v1392_v54, %v1394_v13 }
 0x3fc   : > { %v1400_v43 = vsel %vm1398_vm12, %v1397_v25, %v2672_v16 }
 0x3fd   : > { %1404 = vst.msk [vmem:[%s2133_s6 + $0x8] sm:$0x3f] %vm1403_vm9, %v1400_v43 }
 0x3fe PF: > { %s3430_s30 = sld [smem:[#allocation11_spill]]  ;;  %s3431_s8 = sld [smem:[#allocation13_spill]] }
 0x3ff   : > { %p1618_p3 = scmp.ge.s32.totalorder %s1897_s22, 2 }
 0x404   : > { %s1444_s0 = sand.u32 1, %s3430_s30   ;;  %p3432_p0 = scmp.ne.s32.totalorder %s3431_s8, 0 }
 0x405   : > { %s1445_s18 = scalar_lea.sflag [#allocation4], %s1444_s0 }
 0x406   : > { %p1612_p8 = pnand %p1618_p3, %p3432_p0 }
 0x408   : > { %1852 = dma.done.wait (!%p1612_p8), %s1445_s18, 64  }
 0x409   : > { %1854 = vsyncadd (!%p1612_p8), %s1445_s18, 4294967232  ;;  %s21_s22 = sadd.s32 1, %s1897_s22   ;;  %s3433_s18 = sld [smem:[#allocation12_spill]] }
 0x40a   : > { %p18_p11 = scmp.ge.s32.totalorder %s21_s22, 8   ;;  %s3434_s20 = sld [smem:[#allocation14_spill]] }
 0x40b   : > { %s3435_s6 = sld [smem:[#allocation15_spill]]  ;;  %s3436_s12 = smov %s1861_s13 }
 0x40c   : > { %s3437_s13 = smov %s1865_s14  ;;  %s3438_s14 = smov %s2075_s10 }
 0x40d   : > { %s3439_s15 = smov %s1873_s16  ;;  %s3440_s16 = smov %s1877_s17 }
 0x40e   : > { %s3441_s17 = smov %s2080_s28  ;;  %s3442_s19 = smov %s1893_s21 }
 0x40f   :  { %20 = sbr.rel (!%p18_p11) target bundleno = 12 (0xc), region = 96 }
 0x411   : > { %s3443_s21 = smov %s3435_s6 }
 0x416   :  { %1462 = vsyncpa [#allocation3], 1 }
 0x417   :  { %1464 = vsyncpa [#allocation3 + $0x1], 1 }
 0x418   :  { %1465 = vsyncpa [#allocation6], 1 }
 0x419   :  { %1467 = vsyncpa [#allocation6 + $0x1], 1 }
 0x41a   :  { %1468 = vsyncpa [#allocation4], 1 }
 0x41b   :  { %1470 = vsyncpa [#allocation4 + $0x1], 1 }

</bundles_post_ra>
